<compile_context>
chip_gen: v7x
topology: tpu7x:2x2x1
jax: 0.10.0
libtpu: 0.0.40
codegen_flags: <defaults>
</compile_context>

<pallas_src>
import math

import jax
import jax.numpy as jnp
from jax.experimental import pallas as pl
from jax.experimental.pallas import tpu as pltpu

H = 32            # hidden_size == dmodel == demb (small synthetic size)
POS = 44          # positional-feature dim implied by linear1_rel (hidden*2 + 44*2)
NUM_LABELS = 4
PAD_N = 128       # lane-dense padded classifier output width
NLAYERS = 2       # TODO(synk): TransformerModule uses nlayers=12; shrunk for the synthetic run
B = 2
S = 8
E_PAD = 8         # edges padded to a full sublane (real chain graph has S-1 = 7 edges)
NUM_REL = 55
EPS = 1e-12
NEG = -1e9        # mask bias for softmax

# ---- global weight slab layout (rows of a [G_ROWS, 128] f32 slab) ----
G_LN_G, G_LN_B, G_HID_B, G_TM_G, G_TM_B = 0, 1, 2, 3, 4
G_HIDW = 8          # hid_init_wT           [H, H]       rows 8..39,   cols 0:32
G_RHCAT = 40        # [rel1_h0 | rel1_h1]   [H, 2H]      rows 40..71,  cols 0:64
G_CLSW = 72         # classifier wT         [H, PAD_N]   rows 72..103
G_CLSB = 104        # classifier bias       [1, PAD_N]   row 104
G_ROWS = 112

# ---- per-layer weight slab layout (rows of a [L_ROWS, L_COLS] f32 slab) ----
ROW_HIDP = 0        # fused hid-side projection [H, 5H]:
                    #   [q*s | link_src | link_tgt | qpair_src*s | qpair_tar*s]
ROW_KV = 32         # fused edge projection [H, 4H]: [k | v@out | path_k | path_v@out]
ROW_AGG = 64        # path_agg  [H, 2H]: [agg_wT[:H] | agg_wT[H:]]
ROW_RELC = 96       # rel_edge @ link_w_mid + link_b  [E_PAD, H]  (filled per call)
ROW_OUTB = 104      # out-projection bias   [1, H]
L_ROWS = 112
L_COLS = 5 * H      # 160


# ------------------------------ fused kernel --------------------------------

def _fused_forward_kernel(pairs_ref,           # SMEM scalar-prefetch: [B, 2] int32
                          emb_ref,             # [1, S, H]   per-pair hidden states
                          hbias_ref,           # [1, 1, H]   precomputed pos-term + rel1 bias
                          graph_ref,           # [3, E_PAD, S]: g_src, g_tgt, node_bias
                          gslab_ref,           # [G_ROWS, PAD_N] global weight slab
                          layer_ref,           # [L, L_ROWS, L_COLS] per-layer weight slab
                          o_ref):              # [1, 1, PAD_N]

    def mm(a, b):
        return jnp.dot(a, b, preferred_element_type=jnp.float32)

    def mm_nt(a, b):  # a @ b.T without materializing the transpose
        return jax.lax.dot_general(a, b, (((1,), (1,)), ((), ())),
                                   preferred_element_type=jnp.float32)

    def layernorm(x, g, bta):
        mu = jnp.mean(x, axis=-1, keepdims=True)
        var = jnp.mean(jnp.square(x - mu), axis=-1, keepdims=True)
        return (x - mu) * jax.lax.rsqrt(var + EPS) * g + bta

    def masked_softmax(logits, bias):
        z = logits + bias
        m = jnp.max(z, axis=-1, keepdims=True)
        p = jnp.exp(z - m)
        return p * pl.reciprocal(jnp.sum(p, axis=-1, keepdims=True), approx=True)

    b = pl.program_id(0)
    p0 = pairs_ref[b, 0]
    p1 = pairs_ref[b, 1]

    # ---- index-derived masks rebuilt in-kernel (VPU iota + compares) ----
    row2 = jax.lax.broadcasted_iota(jnp.int32, (2, S), 0)
    col2 = jax.lax.broadcasted_iota(jnp.int32, (2, S), 1)
    sel = jnp.where(col2 == jnp.where(row2 == 0, p0, p1), 1.0, 0.0)   # [2,S] row0=1hot(p0), row1=1hot(p1)

    node_iota = jax.lax.broadcasted_iota(jnp.int32, (S, 1), 0)
    is_src = node_iota == p1                  # rev=True: src = pair[1]
    is_tar = node_iota == p0

    lo = jnp.minimum(p0, p1)
    hi = jnp.maximum(p0, p1)
    e_iota = jax.lax.broadcasted_iota(jnp.int32, (1, E_PAD), 1)
    path_bias = jnp.where((e_iota >= lo) & (e_iota < hi), 0.0, NEG)   # [1, E_PAD]

    g_src = graph_ref[0]                      # [E_PAD, S]
    g_tgt = graph_ref[1]                      # [E_PAD, S]
    node_bias = graph_ref[2]                  # [S, E_PAD]

    gs = gslab_ref[...]                       # [G_ROWS, PAD_N]
    ln_g = gs[G_LN_G:G_LN_G + 1, 0:H]
    ln_b = gs[G_LN_B:G_LN_B + 1, 0:H]
    hid_b = gs[G_HID_B:G_HID_B + 1, 0:H]
    tm_g = gs[G_TM_G:G_TM_G + 1, 0:H]
    tm_b = gs[G_TM_B:G_TM_B + 1, 0:H]
    hid_w = gs[G_HIDW:G_HIDW + H, 0:H]
    rh_cat = gs[G_RHCAT:G_RHCAT + H, 0:2 * H]
    cls_w = gs[G_CLSW:G_CLSW + H, :]
    cls_b = gs[G_CLSB:G_CLSB + 1, :]

    # BERT-output LayerNorm + TransformerModule.hid_init_linear
    emb = emb_ref[0]                          # [S, H]
    hidden = layernorm(emb, ln_g, ln_b)
    hid = mm(hidden, hid_w) + hid_b
    hid_res = hid                             # residual = previous layer's (normalized) output

    for l in range(NLAYERS):                  # unrolled: NLAYERS is small and static
        lw = layer_ref[l]                     # [L_ROWS, L_COLS]
        hidp_w = lw[ROW_HIDP:ROW_HIDP + H, :]           # [H, 5H]
        kv_w = lw[ROW_KV:ROW_KV + H, 0:4 * H]           # [H, 4H]
        agg_w = lw[ROW_AGG:ROW_AGG + H, 0:2 * H]        # [H, 2H]
        rel_c = lw[ROW_RELC:ROW_RELC + E_PAD, 0:H]      # [E_PAD, H] (precomputed rel term)
        out_b = lw[ROW_OUTB:ROW_OUTB + 1, 0:H]          # [1, H]

        # one lane-dense hid-side projection for q / link / pair-q
        P = mm(hid, hidp_w)                             # [S, 5H]
        q = P[:, 0:H]

        # edge embeddings: link_rel_layer(cat(source, rel, target))
        edg = mm(g_src, P[:, H:2 * H]) + mm(g_tgt, P[:, 2 * H:3 * H]) + rel_c   # [E_PAD, H]

        # fused K / (V@out) / path_K / (path_V@out) projection
        kv = mm(edg, kv_w)                              # [E_PAD, 4H]
        k = kv[:, 0:H]
        vout = kv[:, H:2 * H]
        pk = kv[:, 2 * H:3 * H]
        pvout = kv[:, 3 * H:4 * H]

        # pair query (rev=True: src=pair[1], tar=pair[0]); scale folded into weights
        PQ = mm(sel, P[:, 3 * H:5 * H])                 # [2, 2H]
        pair_q = PQ[1:2, 0:H] + PQ[0:1, H:2 * H]        # [1, H]

        # shortest-path attention -> out projection (out_w folded into pvout)
        pattn = masked_softmax(mm_nt(pair_q, pk), path_bias)        # [1, E_PAD]
        path_result = mm(pattn, pvout) + out_b                      # [1, H]

        # per-node attention over incident-edge windows (out_w folded into vout)
        nattn = masked_softmax(mm_nt(q, k), node_bias)              # [S, E_PAD]
        feat = mm(nattn, vout) + out_b                              # [S, H]
        # TODO(synk): nn.Dropout on per-node features skipped (eval-mode semantics).

        # path_agg mixing for the pair endpoints via one 3-row matmul
        fp = mm(sel, feat)                                          # [2, H]: row0=feat[p0], row1=feat[p1]
        C = jnp.concatenate([fp[1:2], path_result, fp[0:1]], axis=0)   # [3, H]
        D = mm(C, agg_w)                                            # [3, 2H]
        src_mix = D[0:1, 0:H] + D[1:2, H:2 * H]                     # [1, H]
        tar_mix = D[1:2, 0:H] + D[2:3, H:2 * H]                     # [1, H]

        returned = jnp.where(is_tar, tar_mix, jnp.where(is_src, src_mix, feat))

        # residual + LayerNorm (TransformerModule)
        hid = layernorm(returned + hid_res, tm_g, tm_b)
        hid_res = hid

    # relation head: linear1_rel hid-branch (pos-branch precomputed) -> LeakyReLU -> classifier
    hp = mm(sel, hid)                                   # [2, H]: cur_h[pair[0]], cur_h[pair[1]]
    D2 = mm(hp, rh_cat)                                 # [2, 2H]
    x_rel = D2[0:1, 0:H] + D2[1:2, H:2 * H] + hbias_ref[0]          # [1, H]
    act = jnp.where(x_rel >= 0, x_rel, 0.1 * x_rel)     # LeakyReLU(0.1), matches nn.LeakyReLU(0.1)
    # TODO(synk): nn.Dropout before the classifier skipped (eval-mode semantics).
    logits = mm(act, cls_w) + cls_b                     # [1, PAD_N]
    o_ref[...] = logits.reshape(1, 1, PAD_N).astype(o_ref.dtype)


# ------------------------------- parameters ---------------------------------

def _xavier_uniform(key, shape):
    fan_out, fan_in = shape
    bound = math.sqrt(6.0 / (fan_in + fan_out))
    return jax.random.uniform(key, shape, jnp.float32, -bound, bound)


def init_raw_params(key):
    """Weights in PyTorch nn.Linear layout: [out_features, in_features]."""
    keys = jax.random.split(key, 64)
    it = iter(keys)

    def xav(shape):
        return _xavier_uniform(next(it), shape)

    def bias(n, fan_in):
        bnd = 1.0 / math.sqrt(fan_in)
        return jax.random.uniform(next(it), (n,), jnp.float32, -bnd, bnd)

    params = dict(
        ln_g=jnp.ones((H,), jnp.float32), ln_b=jnp.zeros((H,), jnp.float32),
        rel_emb=jax.random.normal(next(it), (NUM_REL, H), jnp.float32),
        hid_init_w=xav((H, H)), hid_init_b=bias(H, H),
        tm_ln_g=jnp.ones((H,), jnp.float32), tm_ln_b=jnp.zeros((H,), jnp.float32),
        rel1_w=xav((H, 2 * H + 2 * POS)), rel1_b=bias(H, 2 * H + 2 * POS),
        cls_w=xav((NUM_LABELS, H)), cls_b=bias(NUM_LABELS, H),
        encoders=[],
    )
    for _ in range(NLAYERS):
        params["encoders"].append(dict(
            link_w=xav((H, 3 * H)), link_b=bias(H, 3 * H),
            mha=dict(
                q_pair_w=xav((H, 2 * H)),
                path_k_w=xav((H, H)), path_v_w=xav((H, H)),
                q_w=xav((H, H)), k_w=xav((H, H)), v_w=xav((H, H)),
                out_w=xav((H, H)), out_b=bias(H, H),
                agg_w=xav((H, 2 * H)),
            ),
        ))
    return params


def pack_params(raw):
    """Fuse / fold / pre-transpose everything into two weight slabs:
         gslab       [G_ROWS, PAD_N]   global weights (incl. lane-padded classifier)
         layer_wslab [L, L_ROWS, L_COLS]  per-layer weights (rel-edge rows filled per call)
       Also keeps the pieces needed for the hid-independent host precompute."""
    inv_sqrt_dk = 1.0 / math.sqrt(H)          # folded into q / pair-q weights
    enc = raw["encoders"]

    layer_slabs, link_mid_wT, link_bias = [], [], []
    for e in enc:
        mha = e["mha"]
        link_wT = e["link_w"].T                                  # [3H, H]
        q_wT = mha["q_w"].T * inv_sqrt_dk
        qpair_wT = mha["q_pair_w"].T * inv_sqrt_dk               # [2H, H]
        out_wT = mha["out_w"].T

        hidp = jnp.concatenate(
            [q_wT, link_wT[0:H], link_wT[2 * H:3 * H],
             qpair_wT[0:H], qpair_wT[H:2 * H]], axis=1)          # [H, 5H]
        kv = jnp.concatenate(
            [mha["k_w"].T, mha["v_w"].T @ out_wT,
             mha["path_k_w"].T, mha["path_v_w"].T @ out_wT], axis=1)   # [H, 4H]
        agg_wT = mha["agg_w"].T                                  # [2H, H]
        agg_cat = jnp.concatenate([agg_wT[0:H], agg_wT[H:2 * H]], axis=1)  # [H, 2H]

        slab = jnp.zeros((L_ROWS, L_COLS), jnp.float32)
        slab = slab.at[ROW_HIDP:ROW_HIDP + H, 0:5 * H].set(hidp)
        slab = slab.at[ROW_KV:ROW_KV + H, 0:4 * H].set(kv)
        slab = slab.at[ROW_AGG:ROW_AGG + H, 0:2 * H].set(agg_cat)
        slab = slab.at[ROW_OUTB:ROW_OUTB + 1, 0:H].set(mha["out_b"].reshape(1, H))
        layer_slabs.append(slab)
        link_mid_wT.append(link_wT[H:2 * H])
        link_bias.append(e["link_b"].reshape(1, H))

    rel1_wT = raw["rel1_w"].T                                    # [2H+2POS, H]
    rh0 = rel1_wT[0:H]
    rp0 = rel1_wT[H:H + POS]
    rh1 = rel1_wT[H + POS:2 * H + POS]
    rp1 = rel1_wT[2 * H + POS:]
    rh_cat = jnp.concatenate([rh0, rh1], axis=1)                 # [H, 2H]

    gslab = jnp.zeros((G_ROWS, PAD_N), jnp.float32)
    gslab = gslab.at[G_LN_G, 0:H].set(raw["ln_g"])
    gslab = gslab.at[G_LN_B, 0:H].set(raw["ln_b"])
    gslab = gslab.at[G_HID_B, 0:H].set(raw["hid_init_b"])
    gslab = gslab.at[G_TM_G, 0:H].set(raw["tm_ln_g"])
    gslab = gslab.at[G_TM_B, 0:H].set(raw["tm_ln_b"])
    gslab = gslab.at[G_HIDW:G_HIDW + H, 0:H].set(raw["hid_init_w"].T)
    gslab = gslab.at[G_RHCAT:G_RHCAT + H, 0:2 * H].set(rh_cat)
    gslab = gslab.at[G_CLSW:G_CLSW + H, 0:NUM_LABELS].set(raw["cls_w"].T)
    gslab = gslab.at[G_CLSB, 0:NUM_LABELS].set(raw["cls_b"])

    return dict(
        rel_emb=raw["rel_emb"],
        gslab=gslab,
        layer_wslab=jnp.stack(layer_slabs),                      # [L, L_ROWS, L_COLS]
        link_mid_wT=jnp.stack(link_mid_wT),                      # [L, H, H]
        link_b=jnp.stack(link_bias),                             # [L, 1, H]
        rp0=rp0, rp1=rp1, rel1_b=raw["rel1_b"].reshape(1, H),
    )


# ------------------------------ forward pass ---------------------------------

@jax.jit
def temporal_graph_transformer_forward(params, embs, pos, pairs, edges, deps):
    """embs: [B, S, H] synthetic BERT states, pos: [B, S, POS], pairs: [B, 2] int32,
    edges: [E, 2] int32 (chain graph), deps: [E] int32 dependency-type ids."""
    b_, s_, h_ = embs.shape
    e_ = edges.shape[0]
    l_ = params["layer_wslab"].shape[0]
    assert s_ == S and h_ == H and e_ <= E_PAD and E_PAD == S

    # ---- hid-independent precompute (fuses into the surrounding XLA graph) ----
    # rel-edge term of link_rel_layer, per layer: rel_emb[deps] @ link_w_mid + link_b
    rel_edge = jnp.take(params["rel_emb"], deps, axis=0)                       # [E, H]
    rel_contrib = (jnp.einsum("eh,lhk->lek", rel_edge, params["link_mid_wT"])
                   + params["link_b"])                                         # [L, E, H]
    layer_slab = params["layer_wslab"].at[:, ROW_RELC:ROW_RELC + e_, 0:H].set(rel_contrib)

    # graph structure slab: incidence one-hots + per-node edge-window bias, edges padded to E_PAD
    g_src = jnp.zeros((E_PAD, s_), jnp.float32).at[:e_].set(
        jax.nn.one_hot(edges[:, 0], s_, dtype=jnp.float32))
    g_tgt = jnp.zeros((E_PAD, s_), jnp.float32).at[:e_].set(
        jax.nn.one_hot(edges[:, 1], s_, dtype=jnp.float32))
    n_idx = jnp.arange(s_)
    src_pad = jnp.pad(edges[:, 0], (0, E_PAD - e_), constant_values=-1)
    tgt_pad = jnp.pad(edges[:, 1], (0, E_PAD - e_), constant_values=-1)
    incident = ((src_pad[None, :] == n_idx[:, None]) | (tgt_pad[None, :] == n_idx[:, None]))
    node_bias = jnp.where(incident, 0.0, NEG).astype(jnp.float32)              # [S, E_PAD]
    graph_slab = jnp.stack([g_src, g_tgt, node_bias])                          # [3, E_PAD, S]

    # relation-head position branch (hid-independent): pos[pair0]@rp0 + pos[pair1]@rp1 + rel1_b
    # TODO(synk): original indexes pos via token_ids[...].index(pair[i]); identity mapping assumed.
    pos_sel = jnp.take_along_axis(pos, pairs[:, :, None], axis=1)              # [B, 2, POS]
    head_bias = (pos_sel[:, 0] @ params["rp0"] + pos_sel[:, 1] @ params["rp1"]
                 + params["rel1_b"])[:, None, :]                               # [B, 1, H]

    per_pair3 = lambda b, pr: (b, 0, 0)
    fixed2 = lambda b, pr: (0, 0)
    fixed3 = lambda b, pr: (0, 0, 0)

    out_padded = pl.pallas_call(
        _fused_forward_kernel,
        out_shape=jax.ShapeDtypeStruct((b_, 1, PAD_N), jnp.float32),
        grid_spec=pltpu.PrefetchScalarGridSpec(
            num_scalar_prefetch=1,                      # `pairs` lands in SMEM
            grid=(b_,),
            in_specs=[
                pl.BlockSpec((1, s_, h_), per_pair3),           # emb (per pair)
                pl.BlockSpec((1, 1, h_), per_pair3),            # head_bias (per pair)
                pl.BlockSpec((3, E_PAD, s_), fixed3),           # graph slab (shared)
                pl.BlockSpec((G_ROWS, PAD_N), fixed2),          # global weight slab
                pl.BlockSpec((l_, L_ROWS, L_COLS), fixed3),     # per-layer weight slab
            ],
            out_specs=pl.BlockSpec((1, 1, PAD_N), per_pair3),
        ),
        # one pair per step keeps grid >= 2 so v7x's second TensorCore is used.
        # TODO(synk): on single-core v5e/v6e, multiple pairs per step would amortize
        # the fixed per-step overhead; not needed at this synthetic size.
        compiler_params=pltpu.CompilerParams(dimension_semantics=("parallel",)),
    )(pairs.astype(jnp.int32), embs, head_bias, graph_slab, params["gslab"], layer_slab)

    return out_padded[:, 0, :NUM_LABELS]                                       # [num_pairs, 4]


# ---------------------------------- main -------------------------------------

if __name__ == "__main__":
    key = jax.random.PRNGKey(0)
    kp, ke, kpos = jax.random.split(key, 3)

    # TODO(synk): BertModel.from_pretrained has no Pallas equivalent; synthetic
    # hidden states stand in for pooled_output[0].
    params = pack_params(init_raw_params(kp))
    embs = jax.random.normal(ke, (B, S, H), jnp.float32)
    pos = jax.random.normal(kpos, (B, S, POS), jnp.float32)

    # deterministic chain graph: edges (i, i+1), dependency type i % 55
    edges = jnp.array([[i, i + 1] for i in range(S - 1)], jnp.int32)
    deps = jnp.array([i % NUM_REL for i in range(S - 1)], jnp.int32)
    pairs = jnp.array([[1, 4], [2, 5]], jnp.int32)     # one event pair per sentence

    logits = temporal_graph_transformer_forward(params, embs, pos, pairs, edges, deps)
    jax.block_until_ready(logits)
    assert logits.shape == (pairs.shape[0], NUM_LABELS)
    print("KERNEL_OK")
</pallas_src>

<mosaic_0001>
module attributes {stable_mosaic.version = 11 : i64} {
  func.func @_fused_forward_kernel(%arg0: i32, %arg1: memref<2x2xi32, #tpu.memory_space<smem>>, %arg2: memref<1x8x32xf32, #tpu.memory_space<vmem>>, %arg3: memref<1x1x32xf32, #tpu.memory_space<vmem>>, %arg4: memref<3x8x8xf32, #tpu.memory_space<vmem>>, %arg5: memref<112x128xf32, #tpu.memory_space<vmem>>, %arg6: memref<2x112x160xf32, #tpu.memory_space<vmem>>, %arg7: memref<1x1x128xf32, #tpu.memory_space<vmem>>) attributes {dimension_semantics = [#tpu.dimension_semantics<parallel>], iteration_bounds = array<i64: 2>, scalar_prefetch = 1 : i64, scratch_operands = 0 : i64, tpu.core_type = #tpu.core_type<tc>, window_params = [{transform_indices = @transform_0, window_bounds = array<i64: 1, 8, 32>}, {transform_indices = @transform_1, window_bounds = array<i64: 1, 1, 32>}, {pipeline_mode = #tpu.pipeline_mode<synchronous>, transform_indices = @transform_2, window_bounds = array<i64: 3, 8, 8>}, {pipeline_mode = #tpu.pipeline_mode<synchronous>, transform_indices = @transform_3, window_bounds = array<i64: 112, 128>}, {pipeline_mode = #tpu.pipeline_mode<synchronous>, transform_indices = @transform_4, window_bounds = array<i64: 2, 112, 160>}, {transform_indices = @transform_5, window_bounds = array<i64: 1, 1, 128>}]} {
    %0 = arith.index_cast %arg0 : i32 to index
    %c0 = arith.constant 0 : index
    %1 = memref.load %arg1[%0, %c0] : memref<2x2xi32, #tpu.memory_space<smem>>
    %2 = arith.index_cast %arg0 : i32 to index
    %c1 = arith.constant 1 : index
    %3 = memref.load %arg1[%2, %c1] : memref<2x2xi32, #tpu.memory_space<smem>>
    %4 = tpu.iota {dimensions = array<i32: 0>} : vector<2x8xi32>
    %5 = tpu.iota {dimensions = array<i32: 1>} : vector<2x8xi32>
    %c0_i32 = arith.constant 0 : i32
    %6 = vector.broadcast %c0_i32 : i32 to vector<2x8xi32>
    %7 = arith.cmpi eq, %4, %6 : vector<2x8xi32>
    %8 = vector.broadcast %1 : i32 to vector<2x8xi32>
    %9 = vector.broadcast %3 : i32 to vector<2x8xi32>
    %10 = arith.select %7, %8, %9 : vector<2x8xi1>, vector<2x8xi32>
    %11 = arith.cmpi eq, %5, %10 : vector<2x8xi32>
    %cst = arith.constant 1.000000e+00 : f32
    %cst_0 = arith.constant 0.000000e+00 : f32
    %12 = vector.broadcast %cst : f32 to vector<2x8xf32>
    %13 = vector.broadcast %cst_0 : f32 to vector<2x8xf32>
    %14 = arith.select %11, %12, %13 : vector<2x8xi1>, vector<2x8xf32>
    %15 = tpu.iota {dimensions = array<i32: 0>} : vector<8x1xi32>
    %16 = vector.broadcast %3 : i32 to vector<8x1xi32>
    %17 = arith.cmpi eq, %15, %16 : vector<8x1xi32>
    %18 = vector.broadcast %1 : i32 to vector<8x1xi32>
    %19 = arith.cmpi eq, %15, %18 : vector<8x1xi32>
    %20 = arith.minsi %1, %3 : i32
    %21 = arith.maxsi %1, %3 : i32
    %22 = tpu.iota {dimensions = array<i32: 1>} : vector<1x8xi32>
    %23 = vector.broadcast %20 : i32 to vector<1x8xi32>
    %24 = arith.cmpi sge, %22, %23 : vector<1x8xi32>
    %25 = vector.broadcast %21 : i32 to vector<1x8xi32>
    %26 = arith.cmpi slt, %22, %25 : vector<1x8xi32>
    %27 = arith.andi %24, %26 : vector<1x8xi1>
    %cst_1 = arith.constant 0.000000e+00 : f32
    %cst_2 = arith.constant -1.000000e+09 : f32
    %28 = vector.broadcast %cst_1 : f32 to vector<1x8xf32>
    %29 = vector.broadcast %cst_2 : f32 to vector<1x8xf32>
    %30 = arith.select %27, %28, %29 : vector<1x8xi1>, vector<1x8xf32>
    %c0_3 = arith.constant 0 : index
    %c0_4 = arith.constant 0 : index
    %c0_5 = arith.constant 0 : index
    %31 = vector.load %arg4[%c0_3, %c0_4, %c0_5] : memref<3x8x8xf32, #tpu.memory_space<vmem>>, vector<1x8x8xf32>
    %32 = vector.shape_cast %31 : vector<1x8x8xf32> to vector<8x8xf32>
    %c1_6 = arith.constant 1 : index
    %c0_7 = arith.constant 0 : index
    %c0_8 = arith.constant 0 : index
    %33 = vector.load %arg4[%c1_6, %c0_7, %c0_8] : memref<3x8x8xf32, #tpu.memory_space<vmem>>, vector<1x8x8xf32>
    %34 = vector.shape_cast %33 : vector<1x8x8xf32> to vector<8x8xf32>
    %c2 = arith.constant 2 : index
    %c0_9 = arith.constant 0 : index
    %c0_10 = arith.constant 0 : index
    %35 = vector.load %arg4[%c2, %c0_9, %c0_10] : memref<3x8x8xf32, #tpu.memory_space<vmem>>, vector<1x8x8xf32>
    %36 = vector.shape_cast %35 : vector<1x8x8xf32> to vector<8x8xf32>
    %c0_11 = arith.constant 0 : index
    %c0_12 = arith.constant 0 : index
    %37 = vector.load %arg5[%c0_11, %c0_12] : memref<112x128xf32, #tpu.memory_space<vmem>>, vector<112x128xf32>
    %38 = vector.extract_strided_slice %37 {offsets = [0, 0], sizes = [1, 32], strides = [1, 1]} : vector<112x128xf32> to vector<1x32xf32>
    %39 = vector.extract_strided_slice %37 {offsets = [1, 0], sizes = [1, 32], strides = [1, 1]} : vector<112x128xf32> to vector<1x32xf32>
    %40 = vector.extract_strided_slice %37 {offsets = [2, 0], sizes = [1, 32], strides = [1, 1]} : vector<112x128xf32> to vector<1x32xf32>
    %41 = vector.extract_strided_slice %37 {offsets = [3, 0], sizes = [1, 32], strides = [1, 1]} : vector<112x128xf32> to vector<1x32xf32>
    %42 = vector.extract_strided_slice %37 {offsets = [4, 0], sizes = [1, 32], strides = [1, 1]} : vector<112x128xf32> to vector<1x32xf32>
    %43 = vector.extract_strided_slice %37 {offsets = [8, 0], sizes = [32, 32], strides = [1, 1]} : vector<112x128xf32> to vector<32x32xf32>
    %44 = vector.extract_strided_slice %37 {offsets = [40, 0], sizes = [32, 64], strides = [1, 1]} : vector<112x128xf32> to vector<32x64xf32>
    %45 = vector.extract_strided_slice %37 {offsets = [72, 0], sizes = [32, 128], strides = [1, 1]} : vector<112x128xf32> to vector<32x128xf32>
    %46 = vector.extract_strided_slice %37 {offsets = [104, 0], sizes = [1, 128], strides = [1, 1]} : vector<112x128xf32> to vector<1x128xf32>
    %c0_13 = arith.constant 0 : index
    %c0_14 = arith.constant 0 : index
    %c0_15 = arith.constant 0 : index
    %47 = vector.load %arg2[%c0_13, %c0_14, %c0_15] : memref<1x8x32xf32, #tpu.memory_space<vmem>>, vector<1x8x32xf32>
    %48 = vector.shape_cast %47 : vector<1x8x32xf32> to vector<8x32xf32>
    %cst_16 = arith.constant dense<0.000000e+00> : vector<8xf32>
    %49 = vector.multi_reduction <add>, %48, %cst_16 [1] : vector<8x32xf32> to vector<8xf32>
    %50 = vector.shape_cast %49 : vector<8xf32> to vector<8x1xf32>
    %cst_17 = arith.constant 3.200000e+01 : f32
    %51 = vector.broadcast %cst_17 : f32 to vector<8x1xf32>
    %52 = arith.divf %50, %51 : vector<8x1xf32>
    %53 = vector.broadcast %52 : vector<8x1xf32> to vector<8x32xf32>
    %54 = arith.subf %48, %53 : vector<8x32xf32>
    %55 = arith.mulf %54, %54 : vector<8x32xf32>
    %cst_18 = arith.constant dense<0.000000e+00> : vector<8xf32>
    %56 = vector.multi_reduction <add>, %55, %cst_18 [1] : vector<8x32xf32> to vector<8xf32>
    %57 = vector.shape_cast %56 : vector<8xf32> to vector<8x1xf32>
    %cst_19 = arith.constant 3.200000e+01 : f32
    %58 = vector.broadcast %cst_19 : f32 to vector<8x1xf32>
    %59 = arith.divf %57, %58 : vector<8x1xf32>
    %60 = vector.broadcast %52 : vector<8x1xf32> to vector<8x32xf32>
    %61 = arith.subf %48, %60 : vector<8x32xf32>
    %cst_20 = arith.constant 9.99999996E-13 : f32
    %62 = vector.broadcast %cst_20 : f32 to vector<8x1xf32>
    %63 = arith.addf %59, %62 : vector<8x1xf32>
    %64 = math.rsqrt %63 : vector<8x1xf32>
    %65 = vector.broadcast %64 : vector<8x1xf32> to vector<8x32xf32>
    %66 = arith.mulf %61, %65 : vector<8x32xf32>
    %67 = vector.broadcast %38 : vector<1x32xf32> to vector<8x32xf32>
    %68 = arith.mulf %66, %67 : vector<8x32xf32>
    %69 = vector.broadcast %39 : vector<1x32xf32> to vector<8x32xf32>
    %70 = arith.addf %68, %69 : vector<8x32xf32>
    %cst_21 = arith.constant dense<0.000000e+00> : vector<8x32xf32>
    %71 = tpu.matmul %70, %43, %cst_21 {dimension_numbers = #tpu.dot_dimension_numbers<[1], [0], [0], [1], [0, 0, 1, 1], [], []>} : vector<8x32xf32>, vector<32x32xf32>, vector<8x32xf32> -> vector<8x32xf32>
    %72 = vector.broadcast %40 : vector<1x32xf32> to vector<8x32xf32>
    %73 = arith.addf %71, %72 : vector<8x32xf32>
    %c0_22 = arith.constant 0 : index
    %c0_23 = arith.constant 0 : index
    %c0_24 = arith.constant 0 : index
    %74 = vector.load %arg6[%c0_22, %c0_23, %c0_24] : memref<2x112x160xf32, #tpu.memory_space<vmem>>, vector<1x112x160xf32>
    %75 = vector.shape_cast %74 : vector<1x112x160xf32> to vector<112x160xf32>
    %76 = vector.extract_strided_slice %75 {offsets = [0, 0], sizes = [32, 160], strides = [1, 1]} : vector<112x160xf32> to vector<32x160xf32>
    %77 = vector.extract_strided_slice %75 {offsets = [32, 0], sizes = [32, 128], strides = [1, 1]} : vector<112x160xf32> to vector<32x128xf32>
    %78 = vector.extract_strided_slice %75 {offsets = [64, 0], sizes = [32, 64], strides = [1, 1]} : vector<112x160xf32> to vector<32x64xf32>
    %79 = vector.extract_strided_slice %75 {offsets = [96, 0], sizes = [8, 32], strides = [1, 1]} : vector<112x160xf32> to vector<8x32xf32>
    %80 = vector.extract_strided_slice %75 {offsets = [104, 0], sizes = [1, 32], strides = [1, 1]} : vector<112x160xf32> to vector<1x32xf32>
    %cst_25 = arith.constant dense<0.000000e+00> : vector<8x160xf32>
    %81 = tpu.matmul %73, %76, %cst_25 {dimension_numbers = #tpu.dot_dimension_numbers<[1], [0], [0], [1], [0, 0, 1, 1], [], []>} : vector<8x32xf32>, vector<32x160xf32>, vector<8x160xf32> -> vector<8x160xf32>
    %82 = vector.extract_strided_slice %81 {offsets = [0, 0], sizes = [8, 32], strides = [1, 1]} : vector<8x160xf32> to vector<8x32xf32>
    %83 = vector.extract_strided_slice %81 {offsets = [0, 32], sizes = [8, 32], strides = [1, 1]} : vector<8x160xf32> to vector<8x32xf32>
    %cst_26 = arith.constant dense<0.000000e+00> : vector<8x32xf32>
    %84 = tpu.matmul %32, %83, %cst_26 {dimension_numbers = #tpu.dot_dimension_numbers<[1], [0], [0], [1], [0, 0, 1, 1], [], []>} : vector<8x8xf32>, vector<8x32xf32>, vector<8x32xf32> -> vector<8x32xf32>
    %85 = vector.extract_strided_slice %81 {offsets = [0, 64], sizes = [8, 32], strides = [1, 1]} : vector<8x160xf32> to vector<8x32xf32>
    %cst_27 = arith.constant dense<0.000000e+00> : vector<8x32xf32>
    %86 = tpu.matmul %34, %85, %cst_27 {dimension_numbers = #tpu.dot_dimension_numbers<[1], [0], [0], [1], [0, 0, 1, 1], [], []>} : vector<8x8xf32>, vector<8x32xf32>, vector<8x32xf32> -> vector<8x32xf32>
    %87 = arith.addf %84, %86 : vector<8x32xf32>
    %88 = arith.addf %87, %79 : vector<8x32xf32>
    %cst_28 = arith.constant dense<0.000000e+00> : vector<8x128xf32>
    %89 = tpu.matmul %88, %77, %cst_28 {dimension_numbers = #tpu.dot_dimension_numbers<[1], [0], [0], [1], [0, 0, 1, 1], [], []>} : vector<8x32xf32>, vector<32x128xf32>, vector<8x128xf32> -> vector<8x128xf32>
    %90 = vector.extract_strided_slice %89 {offsets = [0, 0], sizes = [8, 32], strides = [1, 1]} : vector<8x128xf32> to vector<8x32xf32>
    %91 = vector.extract_strided_slice %89 {offsets = [0, 32], sizes = [8, 32], strides = [1, 1]} : vector<8x128xf32> to vector<8x32xf32>
    %92 = vector.extract_strided_slice %89 {offsets = [0, 64], sizes = [8, 32], strides = [1, 1]} : vector<8x128xf32> to vector<8x32xf32>
    %93 = vector.extract_strided_slice %89 {offsets = [0, 96], sizes = [8, 32], strides = [1, 1]} : vector<8x128xf32> to vector<8x32xf32>
    %94 = vector.extract_strided_slice %81 {offsets = [0, 96], sizes = [8, 64], strides = [1, 1]} : vector<8x160xf32> to vector<8x64xf32>
    %cst_29 = arith.constant dense<0.000000e+00> : vector<2x64xf32>
    %95 = tpu.matmul %14, %94, %cst_29 {dimension_numbers = #tpu.dot_dimension_numbers<[1], [0], [0], [1], [0, 0, 1, 1], [], []>} : vector<2x8xf32>, vector<8x64xf32>, vector<2x64xf32> -> vector<2x64xf32>
    %96 = vector.extract_strided_slice %95 {offsets = [1, 0], sizes = [1, 32], strides = [1, 1]} : vector<2x64xf32> to vector<1x32xf32>
    %97 = vector.extract_strided_slice %95 {offsets = [0, 32], sizes = [1, 32], strides = [1, 1]} : vector<2x64xf32> to vector<1x32xf32>
    %98 = arith.addf %96, %97 : vector<1x32xf32>
    %cst_30 = arith.constant dense<0.000000e+00> : vector<1x8xf32>
    %99 = tpu.matmul %98, %92, %cst_30 {dimension_numbers = #tpu.dot_dimension_numbers<[1], [1], [0], [0], [0, 0, 1, 0], [], []>} : vector<1x32xf32>, vector<8x32xf32>, vector<1x8xf32> -> vector<1x8xf32>
    %100 = arith.addf %99, %30 : vector<1x8xf32>
    %cst_31 = arith.constant dense<0xFF800000> : vector<1xf32>
    %101 = vector.multi_reduction <maximumf>, %100, %cst_31 [1] : vector<1x8xf32> to vector<1xf32>
    %102 = vector.shape_cast %101 : vector<1xf32> to vector<1x1xf32>
    %103 = vector.broadcast %102 : vector<1x1xf32> to vector<1x8xf32>
    %104 = arith.subf %100, %103 : vector<1x8xf32>
    %105 = math.exp %104 : vector<1x8xf32>
    %cst_32 = arith.constant dense<0.000000e+00> : vector<1xf32>
    %106 = vector.multi_reduction <add>, %105, %cst_32 [1] : vector<1x8xf32> to vector<1xf32>
    %107 = vector.shape_cast %106 : vector<1xf32> to vector<1x1xf32>
    %108 = tpu.reciprocal %107 {approx = true} : vector<1x1xf32> -> vector<1x1xf32>
    %109 = vector.broadcast %108 : vector<1x1xf32> to vector<1x8xf32>
    %110 = arith.mulf %105, %109 : vector<1x8xf32>
    %cst_33 = arith.constant dense<0.000000e+00> : vector<1x32xf32>
    %111 = tpu.matmul %110, %93, %cst_33 {dimension_numbers = #tpu.dot_dimension_numbers<[1], [0], [0], [1], [0, 0, 1, 1], [], []>} : vector<1x8xf32>, vector<8x32xf32>, vector<1x32xf32> -> vector<1x32xf32>
    %112 = arith.addf %111, %80 : vector<1x32xf32>
    %cst_34 = arith.constant dense<0.000000e+00> : vector<8x8xf32>
    %113 = tpu.matmul %82, %90, %cst_34 {dimension_numbers = #tpu.dot_dimension_numbers<[1], [1], [0], [0], [0, 0, 1, 0], [], []>} : vector<8x32xf32>, vector<8x32xf32>, vector<8x8xf32> -> vector<8x8xf32>
    %114 = arith.addf %113, %36 : vector<8x8xf32>
    %cst_35 = arith.constant dense<0xFF800000> : vector<8xf32>
    %115 = vector.multi_reduction <maximumf>, %114, %cst_35 [1] : vector<8x8xf32> to vector<8xf32>
    %116 = vector.shape_cast %115 : vector<8xf32> to vector<8x1xf32>
    %117 = vector.broadcast %116 : vector<8x1xf32> to vector<8x8xf32>
    %118 = arith.subf %114, %117 : vector<8x8xf32>
    %119 = math.exp %118 : vector<8x8xf32>
    %cst_36 = arith.constant dense<0.000000e+00> : vector<8xf32>
    %120 = vector.multi_reduction <add>, %119, %cst_36 [1] : vector<8x8xf32> to vector<8xf32>
    %121 = vector.shape_cast %120 : vector<8xf32> to vector<8x1xf32>
    %122 = tpu.reciprocal %121 {approx = true} : vector<8x1xf32> -> vector<8x1xf32>
    %123 = vector.broadcast %122 : vector<8x1xf32> to vector<8x8xf32>
    %124 = arith.mulf %119, %123 : vector<8x8xf32>
    %cst_37 = arith.constant dense<0.000000e+00> : vector<8x32xf32>
    %125 = tpu.matmul %124, %91, %cst_37 {dimension_numbers = #tpu.dot_dimension_numbers<[1], [0], [0], [1], [0, 0, 1, 1], [], []>} : vector<8x8xf32>, vector<8x32xf32>, vector<8x32xf32> -> vector<8x32xf32>
    %126 = vector.broadcast %80 : vector<1x32xf32> to vector<8x32xf32>
    %127 = arith.addf %125, %126 : vector<8x32xf32>
    %cst_38 = arith.constant dense<0.000000e+00> : vector<2x32xf32>
    %128 = tpu.matmul %14, %127, %cst_38 {dimension_numbers = #tpu.dot_dimension_numbers<[1], [0], [0], [1], [0, 0, 1, 1], [], []>} : vector<2x8xf32>, vector<8x32xf32>, vector<2x32xf32> -> vector<2x32xf32>
    %129 = vector.extract_strided_slice %128 {offsets = [1, 0], sizes = [1, 32], strides = [1, 1]} : vector<2x32xf32> to vector<1x32xf32>
    %130 = vector.extract_strided_slice %128 {offsets = [0, 0], sizes = [1, 32], strides = [1, 1]} : vector<2x32xf32> to vector<1x32xf32>
    %131 = tpu.concatenate %129, %112, %130 in 0 : vector<1x32xf32>, vector<1x32xf32>, vector<1x32xf32> -> vector<3x32xf32>
    %cst_39 = arith.constant dense<0.000000e+00> : vector<3x64xf32>
    %132 = tpu.matmul %131, %78, %cst_39 {dimension_numbers = #tpu.dot_dimension_numbers<[1], [0], [0], [1], [0, 0, 1, 1], [], []>} : vector<3x32xf32>, vector<32x64xf32>, vector<3x64xf32> -> vector<3x64xf32>
    %133 = vector.extract_strided_slice %132 {offsets = [0, 0], sizes = [1, 32], strides = [1, 1]} : vector<3x64xf32> to vector<1x32xf32>
    %134 = vector.extract_strided_slice %132 {offsets = [1, 32], sizes = [1, 32], strides = [1, 1]} : vector<3x64xf32> to vector<1x32xf32>
    %135 = arith.addf %133, %134 : vector<1x32xf32>
    %136 = vector.extract_strided_slice %132 {offsets = [1, 0], sizes = [1, 32], strides = [1, 1]} : vector<3x64xf32> to vector<1x32xf32>
    %137 = vector.extract_strided_slice %132 {offsets = [2, 32], sizes = [1, 32], strides = [1, 1]} : vector<3x64xf32> to vector<1x32xf32>
    %138 = arith.addf %136, %137 : vector<1x32xf32>
    %139 = vector.shape_cast %17 : vector<8x1xi1> to vector<8x1xi1>
    %140 = vector.broadcast %139 : vector<8x1xi1> to vector<8x32xi1>
    %141 = vector.shape_cast %135 : vector<1x32xf32> to vector<1x32xf32>
    %142 = vector.broadcast %141 : vector<1x32xf32> to vector<8x32xf32>
    %143 = arith.select %140, %142, %127 : vector<8x32xi1>, vector<8x32xf32>
    %144 = vector.shape_cast %19 : vector<8x1xi1> to vector<8x1xi1>
    %145 = vector.broadcast %144 : vector<8x1xi1> to vector<8x32xi1>
    %146 = vector.shape_cast %138 : vector<1x32xf32> to vector<1x32xf32>
    %147 = vector.broadcast %146 : vector<1x32xf32> to vector<8x32xf32>
    %148 = arith.select %145, %147, %143 : vector<8x32xi1>, vector<8x32xf32>
    %149 = arith.addf %148, %73 : vector<8x32xf32>
    %cst_40 = arith.constant dense<0.000000e+00> : vector<8xf32>
    %150 = vector.multi_reduction <add>, %149, %cst_40 [1] : vector<8x32xf32> to vector<8xf32>
    %151 = vector.shape_cast %150 : vector<8xf32> to vector<8x1xf32>
    %cst_41 = arith.constant 3.200000e+01 : f32
    %152 = vector.broadcast %cst_41 : f32 to vector<8x1xf32>
    %153 = arith.divf %151, %152 : vector<8x1xf32>
    %154 = vector.broadcast %153 : vector<8x1xf32> to vector<8x32xf32>
    %155 = arith.subf %149, %154 : vector<8x32xf32>
    %156 = arith.mulf %155, %155 : vector<8x32xf32>
    %cst_42 = arith.constant dense<0.000000e+00> : vector<8xf32>
    %157 = vector.multi_reduction <add>, %156, %cst_42 [1] : vector<8x32xf32> to vector<8xf32>
    %158 = vector.shape_cast %157 : vector<8xf32> to vector<8x1xf32>
    %cst_43 = arith.constant 3.200000e+01 : f32
    %159 = vector.broadcast %cst_43 : f32 to vector<8x1xf32>
    %160 = arith.divf %158, %159 : vector<8x1xf32>
    %161 = vector.broadcast %153 : vector<8x1xf32> to vector<8x32xf32>
    %162 = arith.subf %149, %161 : vector<8x32xf32>
    %cst_44 = arith.constant 9.99999996E-13 : f32
    %163 = vector.broadcast %cst_44 : f32 to vector<8x1xf32>
    %164 = arith.addf %160, %163 : vector<8x1xf32>
    %165 = math.rsqrt %164 : vector<8x1xf32>
    %166 = vector.broadcast %165 : vector<8x1xf32> to vector<8x32xf32>
    %167 = arith.mulf %162, %166 : vector<8x32xf32>
    %168 = vector.broadcast %41 : vector<1x32xf32> to vector<8x32xf32>
    %169 = arith.mulf %167, %168 : vector<8x32xf32>
    %170 = vector.broadcast %42 : vector<1x32xf32> to vector<8x32xf32>
    %171 = arith.addf %169, %170 : vector<8x32xf32>
    %c1_45 = arith.constant 1 : index
    %c0_46 = arith.constant 0 : index
    %c0_47 = arith.constant 0 : index
    %172 = vector.load %arg6[%c1_45, %c0_46, %c0_47] : memref<2x112x160xf32, #tpu.memory_space<vmem>>, vector<1x112x160xf32>
    %173 = vector.shape_cast %172 : vector<1x112x160xf32> to vector<112x160xf32>
    %174 = vector.extract_strided_slice %173 {offsets = [0, 0], sizes = [32, 160], strides = [1, 1]} : vector<112x160xf32> to vector<32x160xf32>
    %175 = vector.extract_strided_slice %173 {offsets = [32, 0], sizes = [32, 128], strides = [1, 1]} : vector<112x160xf32> to vector<32x128xf32>
    %176 = vector.extract_strided_slice %173 {offsets = [64, 0], sizes = [32, 64], strides = [1, 1]} : vector<112x160xf32> to vector<32x64xf32>
    %177 = vector.extract_strided_slice %173 {offsets = [96, 0], sizes = [8, 32], strides = [1, 1]} : vector<112x160xf32> to vector<8x32xf32>
    %178 = vector.extract_strided_slice %173 {offsets = [104, 0], sizes = [1, 32], strides = [1, 1]} : vector<112x160xf32> to vector<1x32xf32>
    %cst_48 = arith.constant dense<0.000000e+00> : vector<8x160xf32>
    %179 = tpu.matmul %171, %174, %cst_48 {dimension_numbers = #tpu.dot_dimension_numbers<[1], [0], [0], [1], [0, 0, 1, 1], [], []>} : vector<8x32xf32>, vector<32x160xf32>, vector<8x160xf32> -> vector<8x160xf32>
    %180 = vector.extract_strided_slice %179 {offsets = [0, 0], sizes = [8, 32], strides = [1, 1]} : vector<8x160xf32> to vector<8x32xf32>
    %181 = vector.extract_strided_slice %179 {offsets = [0, 32], sizes = [8, 32], strides = [1, 1]} : vector<8x160xf32> to vector<8x32xf32>
    %cst_49 = arith.constant dense<0.000000e+00> : vector<8x32xf32>
    %182 = tpu.matmul %32, %181, %cst_49 {dimension_numbers = #tpu.dot_dimension_numbers<[1], [0], [0], [1], [0, 0, 1, 1], [], []>} : vector<8x8xf32>, vector<8x32xf32>, vector<8x32xf32> -> vector<8x32xf32>
    %183 = vector.extract_strided_slice %179 {offsets = [0, 64], sizes = [8, 32], strides = [1, 1]} : vector<8x160xf32> to vector<8x32xf32>
    %cst_50 = arith.constant dense<0.000000e+00> : vector<8x32xf32>
    %184 = tpu.matmul %34, %183, %cst_50 {dimension_numbers = #tpu.dot_dimension_numbers<[1], [0], [0], [1], [0, 0, 1, 1], [], []>} : vector<8x8xf32>, vector<8x32xf32>, vector<8x32xf32> -> vector<8x32xf32>
    %185 = arith.addf %182, %184 : vector<8x32xf32>
    %186 = arith.addf %185, %177 : vector<8x32xf32>
    %cst_51 = arith.constant dense<0.000000e+00> : vector<8x128xf32>
    %187 = tpu.matmul %186, %175, %cst_51 {dimension_numbers = #tpu.dot_dimension_numbers<[1], [0], [0], [1], [0, 0, 1, 1], [], []>} : vector<8x32xf32>, vector<32x128xf32>, vector<8x128xf32> -> vector<8x128xf32>
    %188 = vector.extract_strided_slice %187 {offsets = [0, 0], sizes = [8, 32], strides = [1, 1]} : vector<8x128xf32> to vector<8x32xf32>
    %189 = vector.extract_strided_slice %187 {offsets = [0, 32], sizes = [8, 32], strides = [1, 1]} : vector<8x128xf32> to vector<8x32xf32>
    %190 = vector.extract_strided_slice %187 {offsets = [0, 64], sizes = [8, 32], strides = [1, 1]} : vector<8x128xf32> to vector<8x32xf32>
    %191 = vector.extract_strided_slice %187 {offsets = [0, 96], sizes = [8, 32], strides = [1, 1]} : vector<8x128xf32> to vector<8x32xf32>
    %192 = vector.extract_strided_slice %179 {offsets = [0, 96], sizes = [8, 64], strides = [1, 1]} : vector<8x160xf32> to vector<8x64xf32>
    %cst_52 = arith.constant dense<0.000000e+00> : vector<2x64xf32>
    %193 = tpu.matmul %14, %192, %cst_52 {dimension_numbers = #tpu.dot_dimension_numbers<[1], [0], [0], [1], [0, 0, 1, 1], [], []>} : vector<2x8xf32>, vector<8x64xf32>, vector<2x64xf32> -> vector<2x64xf32>
    %194 = vector.extract_strided_slice %193 {offsets = [1, 0], sizes = [1, 32], strides = [1, 1]} : vector<2x64xf32> to vector<1x32xf32>
    %195 = vector.extract_strided_slice %193 {offsets = [0, 32], sizes = [1, 32], strides = [1, 1]} : vector<2x64xf32> to vector<1x32xf32>
    %196 = arith.addf %194, %195 : vector<1x32xf32>
    %cst_53 = arith.constant dense<0.000000e+00> : vector<1x8xf32>
    %197 = tpu.matmul %196, %190, %cst_53 {dimension_numbers = #tpu.dot_dimension_numbers<[1], [1], [0], [0], [0, 0, 1, 0], [], []>} : vector<1x32xf32>, vector<8x32xf32>, vector<1x8xf32> -> vector<1x8xf32>
    %198 = arith.addf %197, %30 : vector<1x8xf32>
    %cst_54 = arith.constant dense<0xFF800000> : vector<1xf32>
    %199 = vector.multi_reduction <maximumf>, %198, %cst_54 [1] : vector<1x8xf32> to vector<1xf32>
    %200 = vector.shape_cast %199 : vector<1xf32> to vector<1x1xf32>
    %201 = vector.broadcast %200 : vector<1x1xf32> to vector<1x8xf32>
    %202 = arith.subf %198, %201 : vector<1x8xf32>
    %203 = math.exp %202 : vector<1x8xf32>
    %cst_55 = arith.constant dense<0.000000e+00> : vector<1xf32>
    %204 = vector.multi_reduction <add>, %203, %cst_55 [1] : vector<1x8xf32> to vector<1xf32>
    %205 = vector.shape_cast %204 : vector<1xf32> to vector<1x1xf32>
    %206 = tpu.reciprocal %205 {approx = true} : vector<1x1xf32> -> vector<1x1xf32>
    %207 = vector.broadcast %206 : vector<1x1xf32> to vector<1x8xf32>
    %208 = arith.mulf %203, %207 : vector<1x8xf32>
    %cst_56 = arith.constant dense<0.000000e+00> : vector<1x32xf32>
    %209 = tpu.matmul %208, %191, %cst_56 {dimension_numbers = #tpu.dot_dimension_numbers<[1], [0], [0], [1], [0, 0, 1, 1], [], []>} : vector<1x8xf32>, vector<8x32xf32>, vector<1x32xf32> -> vector<1x32xf32>
    %210 = arith.addf %209, %178 : vector<1x32xf32>
    %cst_57 = arith.constant dense<0.000000e+00> : vector<8x8xf32>
    %211 = tpu.matmul %180, %188, %cst_57 {dimension_numbers = #tpu.dot_dimension_numbers<[1], [1], [0], [0], [0, 0, 1, 0], [], []>} : vector<8x32xf32>, vector<8x32xf32>, vector<8x8xf32> -> vector<8x8xf32>
    %212 = arith.addf %211, %36 : vector<8x8xf32>
    %cst_58 = arith.constant dense<0xFF800000> : vector<8xf32>
    %213 = vector.multi_reduction <maximumf>, %212, %cst_58 [1] : vector<8x8xf32> to vector<8xf32>
    %214 = vector.shape_cast %213 : vector<8xf32> to vector<8x1xf32>
    %215 = vector.broadcast %214 : vector<8x1xf32> to vector<8x8xf32>
    %216 = arith.subf %212, %215 : vector<8x8xf32>
    %217 = math.exp %216 : vector<8x8xf32>
    %cst_59 = arith.constant dense<0.000000e+00> : vector<8xf32>
    %218 = vector.multi_reduction <add>, %217, %cst_59 [1] : vector<8x8xf32> to vector<8xf32>
    %219 = vector.shape_cast %218 : vector<8xf32> to vector<8x1xf32>
    %220 = tpu.reciprocal %219 {approx = true} : vector<8x1xf32> -> vector<8x1xf32>
    %221 = vector.broadcast %220 : vector<8x1xf32> to vector<8x8xf32>
    %222 = arith.mulf %217, %221 : vector<8x8xf32>
    %cst_60 = arith.constant dense<0.000000e+00> : vector<8x32xf32>
    %223 = tpu.matmul %222, %189, %cst_60 {dimension_numbers = #tpu.dot_dimension_numbers<[1], [0], [0], [1], [0, 0, 1, 1], [], []>} : vector<8x8xf32>, vector<8x32xf32>, vector<8x32xf32> -> vector<8x32xf32>
    %224 = vector.broadcast %178 : vector<1x32xf32> to vector<8x32xf32>
    %225 = arith.addf %223, %224 : vector<8x32xf32>
    %cst_61 = arith.constant dense<0.000000e+00> : vector<2x32xf32>
    %226 = tpu.matmul %14, %225, %cst_61 {dimension_numbers = #tpu.dot_dimension_numbers<[1], [0], [0], [1], [0, 0, 1, 1], [], []>} : vector<2x8xf32>, vector<8x32xf32>, vector<2x32xf32> -> vector<2x32xf32>
    %227 = vector.extract_strided_slice %226 {offsets = [1, 0], sizes = [1, 32], strides = [1, 1]} : vector<2x32xf32> to vector<1x32xf32>
    %228 = vector.extract_strided_slice %226 {offsets = [0, 0], sizes = [1, 32], strides = [1, 1]} : vector<2x32xf32> to vector<1x32xf32>
    %229 = tpu.concatenate %227, %210, %228 in 0 : vector<1x32xf32>, vector<1x32xf32>, vector<1x32xf32> -> vector<3x32xf32>
    %cst_62 = arith.constant dense<0.000000e+00> : vector<3x64xf32>
    %230 = tpu.matmul %229, %176, %cst_62 {dimension_numbers = #tpu.dot_dimension_numbers<[1], [0], [0], [1], [0, 0, 1, 1], [], []>} : vector<3x32xf32>, vector<32x64xf32>, vector<3x64xf32> -> vector<3x64xf32>
    %231 = vector.extract_strided_slice %230 {offsets = [0, 0], sizes = [1, 32], strides = [1, 1]} : vector<3x64xf32> to vector<1x32xf32>
    %232 = vector.extract_strided_slice %230 {offsets = [1, 32], sizes = [1, 32], strides = [1, 1]} : vector<3x64xf32> to vector<1x32xf32>
    %233 = arith.addf %231, %232 : vector<1x32xf32>
    %234 = vector.extract_strided_slice %230 {offsets = [1, 0], sizes = [1, 32], strides = [1, 1]} : vector<3x64xf32> to vector<1x32xf32>
    %235 = vector.extract_strided_slice %230 {offsets = [2, 32], sizes = [1, 32], strides = [1, 1]} : vector<3x64xf32> to vector<1x32xf32>
    %236 = arith.addf %234, %235 : vector<1x32xf32>
    %237 = vector.shape_cast %17 : vector<8x1xi1> to vector<8x1xi1>
    %238 = vector.broadcast %237 : vector<8x1xi1> to vector<8x32xi1>
    %239 = vector.shape_cast %233 : vector<1x32xf32> to vector<1x32xf32>
    %240 = vector.broadcast %239 : vector<1x32xf32> to vector<8x32xf32>
    %241 = arith.select %238, %240, %225 : vector<8x32xi1>, vector<8x32xf32>
    %242 = vector.shape_cast %19 : vector<8x1xi1> to vector<8x1xi1>
    %243 = vector.broadcast %242 : vector<8x1xi1> to vector<8x32xi1>
    %244 = vector.shape_cast %236 : vector<1x32xf32> to vector<1x32xf32>
    %245 = vector.broadcast %244 : vector<1x32xf32> to vector<8x32xf32>
    %246 = arith.select %243, %245, %241 : vector<8x32xi1>, vector<8x32xf32>
    %247 = arith.addf %246, %171 : vector<8x32xf32>
    %cst_63 = arith.constant dense<0.000000e+00> : vector<8xf32>
    %248 = vector.multi_reduction <add>, %247, %cst_63 [1] : vector<8x32xf32> to vector<8xf32>
    %249 = vector.shape_cast %248 : vector<8xf32> to vector<8x1xf32>
    %cst_64 = arith.constant 3.200000e+01 : f32
    %250 = vector.broadcast %cst_64 : f32 to vector<8x1xf32>
    %251 = arith.divf %249, %250 : vector<8x1xf32>
    %252 = vector.broadcast %251 : vector<8x1xf32> to vector<8x32xf32>
    %253 = arith.subf %247, %252 : vector<8x32xf32>
    %254 = arith.mulf %253, %253 : vector<8x32xf32>
    %cst_65 = arith.constant dense<0.000000e+00> : vector<8xf32>
    %255 = vector.multi_reduction <add>, %254, %cst_65 [1] : vector<8x32xf32> to vector<8xf32>
    %256 = vector.shape_cast %255 : vector<8xf32> to vector<8x1xf32>
    %cst_66 = arith.constant 3.200000e+01 : f32
    %257 = vector.broadcast %cst_66 : f32 to vector<8x1xf32>
    %258 = arith.divf %256, %257 : vector<8x1xf32>
    %259 = vector.broadcast %251 : vector<8x1xf32> to vector<8x32xf32>
    %260 = arith.subf %247, %259 : vector<8x32xf32>
    %cst_67 = arith.constant 9.99999996E-13 : f32
    %261 = vector.broadcast %cst_67 : f32 to vector<8x1xf32>
    %262 = arith.addf %258, %261 : vector<8x1xf32>
    %263 = math.rsqrt %262 : vector<8x1xf32>
    %264 = vector.broadcast %263 : vector<8x1xf32> to vector<8x32xf32>
    %265 = arith.mulf %260, %264 : vector<8x32xf32>
    %266 = vector.broadcast %41 : vector<1x32xf32> to vector<8x32xf32>
    %267 = arith.mulf %265, %266 : vector<8x32xf32>
    %268 = vector.broadcast %42 : vector<1x32xf32> to vector<8x32xf32>
    %269 = arith.addf %267, %268 : vector<8x32xf32>
    %cst_68 = arith.constant dense<0.000000e+00> : vector<2x32xf32>
    %270 = tpu.matmul %14, %269, %cst_68 {dimension_numbers = #tpu.dot_dimension_numbers<[1], [0], [0], [1], [0, 0, 1, 1], [], []>} : vector<2x8xf32>, vector<8x32xf32>, vector<2x32xf32> -> vector<2x32xf32>
    %cst_69 = arith.constant dense<0.000000e+00> : vector<2x64xf32>
    %271 = tpu.matmul %270, %44, %cst_69 {dimension_numbers = #tpu.dot_dimension_numbers<[1], [0], [0], [1], [0, 0, 1, 1], [], []>} : vector<2x32xf32>, vector<32x64xf32>, vector<2x64xf32> -> vector<2x64xf32>
    %272 = vector.extract_strided_slice %271 {offsets = [0, 0], sizes = [1, 32], strides = [1, 1]} : vector<2x64xf32> to vector<1x32xf32>
    %273 = vector.extract_strided_slice %271 {offsets = [1, 32], sizes = [1, 32], strides = [1, 1]} : vector<2x64xf32> to vector<1x32xf32>
    %274 = arith.addf %272, %273 : vector<1x32xf32>
    %c0_70 = arith.constant 0 : index
    %c0_71 = arith.constant 0 : index
    %c0_72 = arith.constant 0 : index
    %275 = vector.load %arg3[%c0_70, %c0_71, %c0_72] : memref<1x1x32xf32, #tpu.memory_space<vmem>>, vector<1x1x32xf32>
    %276 = vector.shape_cast %275 : vector<1x1x32xf32> to vector<1x32xf32>
    %277 = arith.addf %274, %276 : vector<1x32xf32>
    %cst_73 = arith.constant 0.000000e+00 : f32
    %278 = vector.broadcast %cst_73 : f32 to vector<1x32xf32>
    %279 = arith.cmpf oge, %277, %278 : vector<1x32xf32>
    %cst_74 = arith.constant 1.000000e-01 : f32
    %280 = vector.broadcast %cst_74 : f32 to vector<1x32xf32>
    %281 = arith.mulf %280, %277 : vector<1x32xf32>
    %282 = arith.select %279, %277, %281 : vector<1x32xi1>, vector<1x32xf32>
    %cst_75 = arith.constant dense<0.000000e+00> : vector<1x128xf32>
    %283 = tpu.matmul %282, %45, %cst_75 {dimension_numbers = #tpu.dot_dimension_numbers<[1], [0], [0], [1], [0, 0, 1, 1], [], []>} : vector<1x32xf32>, vector<32x128xf32>, vector<1x128xf32> -> vector<1x128xf32>
    %284 = arith.addf %283, %46 : vector<1x128xf32>
    %285 = vector.shape_cast %284 : vector<1x128xf32> to vector<1x1x128xf32>
    %c0_76 = arith.constant 0 : index
    %c0_77 = arith.constant 0 : index
    %c0_78 = arith.constant 0 : index
    %286 = vector.load %arg7[%c0_76, %c0_77, %c0_78] : memref<1x1x128xf32, #tpu.memory_space<vmem>>, vector<1x1x128xf32>
    tpu.vector_store %arg7[%c0_76, %c0_77, %c0_78], %285 {strides = array<i32>} : memref<1x1x128xf32, #tpu.memory_space<vmem>>, vector<1x1x128xf32>,
    return
  }
  func.func @transform_0(%arg0: i32, %arg1: memref<2x2xi32, #tpu.memory_space<smem>>) -> (i32, i32, i32) {
    %c0_i32 = arith.constant 0 : i32
    %c0_i32_0 = arith.constant 0 : i32
    %c0_i32_1 = arith.constant 0 : i32
    return %arg0, %c0_i32, %c0_i32_0 : i32, i32, i32
  }
  func.func @transform_1(%arg0: i32, %arg1: memref<2x2xi32, #tpu.memory_space<smem>>) -> (i32, i32, i32) {
    %c0_i32 = arith.constant 0 : i32
    %c0_i32_0 = arith.constant 0 : i32
    %c0_i32_1 = arith.constant 0 : i32
    return %arg0, %c0_i32, %c0_i32_0 : i32, i32, i32
  }
  func.func @transform_2(%arg0: i32, %arg1: memref<2x2xi32, #tpu.memory_space<smem>>) -> (i32, i32, i32) {
    %c0_i32 = arith.constant 0 : i32
    %c0_i32_0 = arith.constant 0 : i32
    %c0_i32_1 = arith.constant 0 : i32
    %c0_i32_2 = arith.constant 0 : i32
    return %c0_i32, %c0_i32_0, %c0_i32_1 : i32, i32, i32
  }
  func.func @transform_3(%arg0: i32, %arg1: memref<2x2xi32, #tpu.memory_space<smem>>) -> (i32, i32) {
    %c0_i32 = arith.constant 0 : i32
    %c0_i32_0 = arith.constant 0 : i32
    %c0_i32_1 = arith.constant 0 : i32
    return %c0_i32, %c0_i32_0 : i32, i32
  }
  func.func @transform_4(%arg0: i32, %arg1: memref<2x2xi32, #tpu.memory_space<smem>>) -> (i32, i32, i32) {
    %c0_i32 = arith.constant 0 : i32
    %c0_i32_0 = arith.constant 0 : i32
    %c0_i32_1 = arith.constant 0 : i32
    %c0_i32_2 = arith.constant 0 : i32
    return %c0_i32, %c0_i32_0, %c0_i32_1 : i32, i32, i32
  }
  func.func @transform_5(%arg0: i32, %arg1: memref<2x2xi32, #tpu.memory_space<smem>>) -> (i32, i32, i32) {
    %c0_i32 = arith.constant 0 : i32
    %c0_i32_0 = arith.constant 0 : i32
    %c0_i32_1 = arith.constant 0 : i32
    return %arg0, %c0_i32, %c0_i32_0 : i32, i32, i32
  }
}

</mosaic_0001>

<bundles_post_ra>
// kernel: temporal_graph_transformer_forward.1
= control target key start
LH: loop header
LB: loop body
LE: loop exit
PB: predicated region body
PF: predicated region fallthrough
CT: control target
= control target key end

     0   :  { %s3615_s0 = inlined_call_operand.vmem [shape: s32[2,2], index: 0, kind: input, shape index: {}]   ;;  %s3616_s1 = inlined_call_operand.vmem [shape: f32[2,8,32], index: 1, kind: input, shape index: {}]   ;;  %s3617_s2 = inlined_call_operand.vmem [shape: f32[2,1,32], index: 2, kind: input, shape index: {}]   ;;  %s3618_s3 = inlined_call_operand.vmem [shape: f32[3,8,8], index: 3, kind: input, shape index: {}]   ;;  %s3619_s4 = inlined_call_operand.vmem [shape: f32[112,128], index: 4, kind: input, shape index: {}]   ;;  %s3620_s5 = inlined_call_operand.vmem [shape: f32[2,112,160], index: 5, kind: input, shape index: {}]   ;;  %s3621_s6 = inlined_call_operand.hbm [shape: f32[2,1,128], index: 6, kind: output, shape index: {}]  }
   0x1   :  { %s11_s23 = sshll.u32 %s3615_s0, 4  ;;  %s12_s23 = int_to_ptr.vmem [resolvable:$true] %s11_s23 }
   0x2   :  { %s2960_s24 = scalar_lea.vmem %s12_s23, 32  ;;  %p2965_p1 = scmp.lt.s32.totalorder %s12_s23, %s12_s23 }
   0x3   :  { %p2961_p0 = scmp.ne.s32.totalorder %s12_s23, %s2960_s24  ;;  %p2966_p2 = scmp.lt.s32.totalorder %s2960_s24, %s2960_s24 }
   0x5   :  { %p2967_p3 = por %p2966_p2, %p2965_p1 }
   0x7   :  { %p2968_p4 = pnand %p2967_p3, %p2961_p0 }
   0x9   :  { %2971 = shalt.err (!%p2968_p4)  }
   0xa   :  { %s3038_s25 = smov [#allocation3]  }
   0xb   :  { %14 = dma.vmem_to_smem %s12_s23, 32, %s3038_s25, [#allocation2] }
   0xc   :  { %3016 = dma.done.wait [#allocation2], 32 }
   0xd   :  { %3017 = vsyncadd [#allocation2], 4294967264 }
   0xe   :  { %16 = sfence }
   0xf   :  { %17 = vsyncpa [#allocation5], 0 }
  0x10   :  { %19 = vsyncpa [#allocation5 + $0x1], 0  ;;  %s3085_s26 = smov 0   ;;  %s3087_s27 = smov 0  }
  0x11   :  { %s3089_s0 = smov 0   ;;  %s3091_s28 = smov 0  }
  0x12 LB: > { %s3106_s29 = sadd.s32 4294967295, %s3036_s28   ;;  %s2543_s30 = sadd.s32 4294967294, %s3036_s28   ;;  %s3036_s28 = sphi %s3091_s28, %s3631_s28   ;;  %s3032_s0 = sphi %s3089_s0, %s3630_s0   ;;  %s3028_s27 = sphi %s3087_s27, %s3629_s27   ;;  %s3024_s26 = sphi %s3085_s26, %s3628_s26  }
  0x13   : > { %s3110_s7 = sadd.s32 1, %s3036_s28   ;;  %s147_s8 = sadd.s32 1, %s3032_s0 }
  0x14   : > { %s144_s9 = ssub.s32 %s3036_s28, %s3110_s7  ;;  %p157_p5 = scmp.ne.s32.totalorder %s3032_s0, %s3028_s27 }
  0x15   : > { %p145_p6 = scmp.eq.s32.totalorder %s144_s9, 0  ;;  %p158_p7 = scmp.eq.s32.totalorder %s3106_s29, 1 }
  0x16   : > { %p163_p8 = scmp.ne.s32.totalorder %s3028_s27, %s3024_s26  ;;  %p164_p9 = scmp.eq.s32.totalorder %s2543_s30, 1 }
  0x17   : > { %s3121_s10 = scalar_select %p145_p6, %s3032_s0, %s147_s8  }
  0x18   : > { %p3123_p10 = por %p158_p7, %p157_p5  ;;  %p3127_p11 = por %p164_p9, %p163_p8 }
  0x19   : > { %p2546_p12 = scmp.ge.s32.totalorder %s3036_s28, 1  ;;  %p204_p13 = scmp.lt.s32.totalorder %s3036_s28, 3 }
  0x1b   : > { %p205_p0 = pnand %p2546_p12, %p204_p13 }
  0x1c   : > { %p233_p1 = scmp.lt.s32.totalorder (!%p205_p0), %s3106_s29, 1  ;;  %vm286_vm0 = vcmask (!%p205_p0), 261120   ;;  %v272_v7 = vld [vmem:[%s3619_s4 + $0x8] sm:$0xff] (!%p205_p0)  ;;  %v273_v8 = vld [vmem:[%s3619_s4 + $0x10] sm:$0xff] (!%p205_p0)  ;;  %v274_v9 = vld [vmem:[%s3619_s4 + $0x18] sm:$0xff] (!%p205_p0)  ;;  %v3039_v10 = vmov (!%p205_p0), 0.0|0.0   ;;  %v244_v26 = vlaneseq (!%p205_p0) }
  0x1d   : > { %208 = sbr.rel (%p205_p0) target bundleno = 6323 (0x18b3), region = 40  ;;  %2833 = vmatprep.subr.bf16.mxu0 (!%p205_p0), %v3039_v10  ;;  %v2834_v11 = vpack.c.bf16 (!%p205_p0), %v273_v8, %v272_v7  ;;  %v275_v12 = vld [vmem:[%s3619_s4 + $0x20] sm:$0xff] (!%p205_p0)  ;;  %vm3040_vm1 = vmmov (!%p205_p0), 0   ;;  %v3041_v13 = vmov (!%p205_p0), 0.0   ;;  %v389_v15 = vld [vmem:[%s3620_s5 + $0x8] sm:$0xff] (!%p205_p0)  ;;  %v391_v16 = vld [vmem:[%s3620_s5 + $0x18] sm:$0xff] (!%p205_p0) }
  0x1e   : > { %2679 = vmatprep.mubr.msk.f32.mxu0 (!%p205_p0), %vm3040_vm1, %v3041_v13  ;;  %473 = vmatprep.mubr.f32.mxu1 (!%p205_p0), %v3041_v13  ;;  %v2837_v14 = vpack.c.bf16 (!%p205_p0), %v275_v12, %v274_v9  ;;  %v388_v17 = vld [vmem:[%s3620_s5] sm:$0xff] (!%p205_p0)  ;;  %v2839_v18 = vpack.c.bf16 (!%p205_p0), %v391_v16, %v389_v15  ;;  %v390_v19 = vld [vmem:[%s3620_s5 + $0x10] sm:$0xff] (!%p205_p0)  ;;  %v393_v20 = vld [vmem:[%s3620_s5 + $0x28] sm:$0xff] (!%p205_p0)  ;;  %v3179_v28 = vshrl.u32 (!%p205_p0), %v244_v26, 7  ;;  %s3043_s15 = smov (!%p205_p0), 64   ;;  %s3044_s16 = smov (!%p205_p0), 96  }
  0x1f   : > { %2835 = vmatpush3.bf16.msra.mxu0 (!%p205_p0), %v2834_v11  ;;  %v395_v21 = vld [vmem:[%s3620_s5 + $0x38] sm:$0xff] (!%p205_p0)  ;;  %v2841_v22 = vpack.c.bf16 (!%p205_p0), %v390_v19, %v388_v17  ;;  %v3187_v30 = vld [vmem:[%s3619_s4] sm:$0xff] (!%p205_p0)  ;;  %v394_v39 = vld [vmem:[%s3620_s5 + $0x30] sm:$0xff] (!%p205_p0)  ;;  %vm484_vm2 = vcmask (!%p205_p0), 64512   ;;  %v247_v55 = vand.u32 (!%p205_p0), 127, %v244_v26  ;;  %vm873_vm8 = vcmask (!%p205_p0), 57344  }
  0x20   : > { %2836 = vmatprep.subr.bf16.mxu0 (!%p205_p0), %v3039_v10  ;;  %v2843_v23 = vpack.c.bf16 (!%p205_p0), %v395_v21, %v393_v20  ;;  %2840 = vmatprep.subr.bf16.mxu1 (!%p205_p0), %v2839_v18  ;;  %v3182_v29 = vsub.s32 (!%p205_p0), 0, %v3179_v28  ;;  %v3190_v31 = vsub.s32 (!%p205_p0), 1, %v3179_v28  ;;  %v392_v38 = vld [vmem:[%s3620_s5 + $0x20] sm:$0xff] (!%p205_p0)  ;;  %v313_v41 = vsub.s32 (!%p205_p0), 2, %v3179_v28  ;;  %v397_v49 = vld [vmem:[%s3620_s5 + $0x50] sm:$0xff] (!%p205_p0)  ;;  %v3237_v50 = vld [vmem:[%s3618_s3 + $0x8] sm:$0xff] (!%p205_p0) }
  0x21   : > { %2842 = vmatpush1.bf16.msra.mxu1 (!%p205_p0), %v2841_v22  ;;  %v2845_v40 = vpack.c.bf16 (!%p205_p0), %v394_v39, %v392_v38  ;;  %v396_v48 = vld [vmem:[%s3620_s5 + $0x40] sm:$0xff] (!%p205_p0)  ;;  %vm248_vm3 = vcmp.eq.s32.totalorder (!%p205_p0), %v3179_v28, 0  ;;  %v3045_v22 = vmov (!%p205_p0), -1e+09   ;;  %vm1204_vm9 = vcmask (!%p205_p0), 1040384  }
  0x22   : > { %2844 = vmatprep.subr.bf16.mxu1 (!%p205_p0), %v2843_v23  ;;  %v304_v32 = vrot.slane (!%p205_p0), %v3187_v30, %v3182_v29  ;;  %v309_v35 = vrot.slane (!%p205_p0), %v3187_v30, %v3190_v31  ;;  %v314_v42 = vrot.slane (!%p205_p0), %v3187_v30, %v313_v41  ;;  %v2848_v53 = vpack.c.bf16 (!%p205_p0), %v397_v49, %v396_v48  ;;  %v3252_v57 = vld [vmem:[%s3618_s3] sm:$0xff] (!%p205_p0) }
  0x23   : > { %2838 = vmatpush3.bf16.msra.mxu0 (!%p205_p0), %v2837_v14  ;;  %v398_v63 = vld [vmem:[%s3620_s5 + $0x60] sm:$0xff] (!%p205_p0)  ;;  %vm1206_vm10 = vcmask (!%p205_p0), 1041408  }
  0x24   : > { %s3135_s13 = scalar_select %p233_p1, %s3106_s29, 1  ;;  %2682 = vmatprep.subr.mxu0 %v3041_v13 }
  0x25   : > { %2846 = vmatpush1.bf16.msra.mxu1 %v2845_v40 }
  0x26   : > { %s2547_s14 = sshll.u32 %s3135_s13, 3  ;;  %2687 = vmatprep.subr.mxu1 %v3041_v13 }
  0x27   : > { %s236_s17 = scalar_lea.vmem %s3616_s1, %s2547_s14  ;;  %s3042_s14 = smov 32  }
  0x28   : > { %v285_v0 = vld [vmem:[%s236_s17] sm:$0xff]  ;;  %s2548_s17 = sshll.u32 %s3106_s29, 7 }
  0x29   : > { %v287_v1 = vsel %vm286_vm0, %v285_v0, 0.0  ;;  %s242_s18 = sadd.s32 1, %s2548_s17  ;;  %s3224_s19 = sld [smem:[#allocation3 + %s2548_s17]] }
  0x2a   : > { %288 = vadd.xlane.f32.xlu0 %v287_v1  ;;  %s3226_s20 = sld [smem:[#allocation3 + %s242_s18]] }
  0x2f   : > { %v249_v51 = vstv %s3224_s19 }
  0x30   : > { %v250_v52 = vstv %s3226_s20  ;;  %p256_p2 = scmp.lt.s32.totalorder %s3224_s19, %s3226_s20  ;;  %p258_p3 = scmp.gt.s32.totalorder %s3224_s19, %s3226_s20  ;;  %vm3367_vm12 = vcmp.eq.s32.totalorder %v3179_v28, %v249_v51 }
  0x31   : > { %v251_v56 = vsel %vm248_vm3, %v249_v51, %v250_v52  ;;  %vm3358_vm11 = vcmp.eq.s32.totalorder %v3179_v28, %v250_v52 }
  0x32   : > { %vm252_vm4 = vcmp.eq.s32.totalorder %v247_v55, %v251_v56  ;;  %s257_s25 = scalar_select %p256_p2, %s3224_s19, %s3226_s20 }
  0x33   : > { %v3263_v61 = vsel %vm252_vm4, 1.0, %v3041_v13  ;;  %s259_s30 = scalar_select %p258_p3, %s3224_s19, %s3226_s20 }
  0x34   : > { %v260_v20 = vstv %s257_s25 }
  0x35   : > { %v262_v21 = vstv %s259_s30  ;;  %vm261_vm5 = vcmp.ge.s32.totalorder %v247_v55, %v260_v20 }
  0x36   : > { %vm263_vm6 = vcmp.lt.s32.totalorder %v247_v55, %v262_v21 }
  0x37   : > { %vm264_vm7 = vmand %vm261_vm5, %vm263_vm6 }
  0x38   : > { %v3305_v23 = vsel %vm264_vm7, 0.0, %v3045_v22 }
  0xb7   : > { %v289_v2 = vpop.xlane.xlu0 %288 }
  0xb8   : > { %v291_v3 = vmul.f32 0.03125, %v289_v2 }
  0xba   : > { %v292_v4 = vsub.f32 %v285_v0, %v291_v3  ;;  %v399_v0 = vld [vmem:[%s3620_s5 + $0x70] sm:$0xff] }
  0xbb   : > { %v2851_v1 = vpack.c.bf16 %v399_v0, %v398_v63  ;;  %v405_v0 = vld [vmem:[%s3620_s5 + $0xd0] sm:$0xff] }
  0xbc   : > { %v293_v5 = vmul.f32 %v292_v4, %v292_v4 }
  0xbe   : > { %v294_v6 = vsel %vm286_vm0, %v293_v5, 0.0 }
  0xbf   : > { %295 = vadd.xlane.f32.xlu0 %v294_v6 }
 0x14c   : > { %v296_v24 = vpop.xlane.xlu0 %295 }
 0x14d   : > { %v297_v25 = vmul.f32 0.03125, %v296_v24 }
 0x14f   : > { %v298_v27 = vadd.f32 1e-12, %v297_v25 }
 0x151   : > { %2938 = vrsqrt.f32 %v298_v27  ;;  %v3311_v27 = vld [vmem:[%s3618_s3 + $0x10] sm:$0xff] }
 0x15b   : > { %v2939_v33 = vpop.eup %2938 }
 0x15c   : > { %v300_v34 = vmul.f32 %v2939_v33, %v292_v4  ;;  %v404_v4 = vld [vmem:[%s3620_s5 + $0xc0] sm:$0xff] }
 0x15e   : > { %v305_v36 = vmul.f32 %v304_v32, %v300_v34 }
 0x160   : > { %v310_v37 = vadd.f32 %v309_v35, %v305_v36 }
 0x162   : > { %2680 = vmatmul.mubr.msk.f32.vlgmr.msra.gmra.mrb[0].mxu0 %vm286_vm0, %v310_v37 }
 0x163   : > { %2684 = vmatprep.mubr.msk.f32.mxu0 %vm3040_vm1, %v3041_v13 }
 0x235   : > { %v384_v43 = vpop.f32.mrb[0].mxu0 }
 0x236   : > { %v3208_v44 = vadd.f32 %v384_v43, %v314_v42  ;;  %v2681_v45 = vpop.f32.mrb[1].mxu0 }
 0x238   : > { %2552 = vmatmul.mubr.msk.f32.vlgmr.msra.gmra.mrb[0].mxu1 %vm286_vm0, %v3208_v44 }
 0x239   : > { %2689 = vmatprep.mubr.msk.f32.mxu1 %vm3040_vm1, %v3041_v13 }
 0x30b   : > { %v3214_v46 = vpop.f32.mrb[0].mxu1 }
 0x30c   : > { %709 = vrot.lane.b32.xlu0 %v3214_v46, %s3042_s14  ;;  %481 = vrot.lane.b32.xlu1 %v3214_v46, %s3043_s15  ;;  %v477_v47 = vpop.f32.mrb[1].mxu1 }
 0x310   : > { %558 = vrot.lane.b32.xlu1 %v3214_v46, %s3044_s16 }
 0x314   : > { %711 = vrot.lane.b32.xlu1 %v477_v47, %s3042_s14 }
 0x37e   : > { %v482_v54 = vpop.permute.xlu1 %481  ;;  %v710_v59 = vpop.permute.xlu0 %709 }
 0x37f   : > { %2683 = vmatpush3.msra.mxu0 %v482_v54 }
 0x380   : > { %2685 = vmatmul.mubr.msk.f32.vlgmr.msra.gmra.mrb[2].mxu0 %vm484_vm2, %v3237_v50  ;;  %2847 = vmatprep.subr.bf16.mxu0 %v3039_v10 }
 0x381   : > { %2849 = vmatpush3.bf16.msra.mxu0 %v2848_v53  ;;  %2700 = vmatprep.mubr.msk.f32.mxu0 %vm3040_vm1, %v3041_v13 }
 0x382   : > { %v559_v58 = vpop.permute.xlu1 %558  ;;  %2850 = vmatprep.subr.bf16.mxu0 %v3039_v10 }
 0x383   : > { %2688 = vmatpush3.msra.mxu1 %v559_v58 }
 0x384   : > { %2690 = vmatmul.mubr.msk.f32.vlgmr.msra.gmra.mrb[2].mxu1 %vm484_vm2, %v3252_v57  ;;  %2703 = vmatprep.subr.mxu1 %v3041_v13 }
 0x385   : > { %2705 = vmatprep.mubr.msk.f32.mxu1 %vm3040_vm1, %v3041_v13  ;;  %2852 = vmatpush3.bf16.msra.mxu0 %v2851_v1 }
 0x386   : > { %v712_v60 = vpop.permute.xlu1 %711  ;;  %2713 = vmatprep.subr.mxu0 %v3041_v13 }
 0x387   : > { %v713_v62 = vsel %vm286_vm0, %v710_v59, %v712_v60  ;;  %v400_v60 = vld [vmem:[%s3620_s5 + $0x80] sm:$0xff] }
 0x388   : > { %2704 = vmatpush3.msra.mxu1 %v713_v62  ;;  %v401_v62 = vld [vmem:[%s3620_s5 + $0x90] sm:$0xff] }
 0x389   : > { %2706 = vmatmul.mubr.msk.f32.vlgmr.msra.gmra.mrb[4].mxu1 %vm484_vm2, %v3263_v61  ;;  %2708 = vmatprep.subr.mxu1 %v3041_v13  ;;  %v2854_v63 = vpack.c.bf16 %v401_v62, %v400_v60  ;;  %v1317_v62 = vsub.s32 3, %v3179_v28 }
 0x38a   : > { %2710 = vmatprep.mubr.msk.f32.mxu1 %vm3040_vm1, %v3041_v13 }
 0x453   : > { %v554_v2 = vpop.f32.mrb[2].mxu0 }
 0x454   : > { %v2686_v3 = vpop.f32.mrb[3].mxu0 }
 0x455   : > { %v1049_v3 = vrot.slane %v405_v0, %v3182_v29 }
 0x457   : > { %v630_v5 = vpop.f32.mrb[2].mxu1 }
 0x458   : > { %v631_v6 = vadd.f32 %v630_v5, %v554_v2  ;;  %v2691_v7 = vpop.f32.mrb[3].mxu1 }
 0x459   : > { %v402_v7 = vld [vmem:[%s3620_s5 + $0xa0] sm:$0xff] }
 0x45a   : > { %v634_v8 = vadd.f32 %v631_v6, %v404_v4 }
 0x45c   : > { %2701 = vmatmul.mubr.msk.f32.vlgmr.msra.gmra.mrb[4].mxu0 %vm286_vm0, %v634_v8  ;;  %v784_v9 = vpop.f32.mrb[4].mxu1  ;;  %v403_v8 = vld [vmem:[%s3620_s5 + $0xb0] sm:$0xff] }
 0x45d   : > { %v789_v11 = vrot.slane %v784_v9, 7  ;;  %v2707_v12 = vpop.f32.mrb[5].mxu1  ;;  %2715 = vmatprep.mubr.msk.f32.mxu0 %vm3040_vm1, %v3041_v13 }
 0x45f   : > { %790 = vrot.lane.b32.xlu1 %v789_v11, %s3044_s16 }
 0x4d1   : > { %v791_v16 = vpop.permute.xlu1 %790 }
 0x4d2   : > { %v793_v17 = vadd.f32 %v791_v16, %v784_v9  ;;  %v2857_v9 = vpack.c.bf16 %v403_v8, %v402_v7  ;;  %v2574_v7 = vld [vmem:[%s3620_s5 + $0x130] sm:$0xff] }
 0x4d4   : > { %v795_v19 = vrot.slane %v793_v17, 1 }
 0x52f   : > { %v704_v14 = vpop.f32.mrb[4].mxu0 }
 0x530   : > { %797 = vrot.lane.b32.xlu1 %v704_v14, %s3043_s15  ;;  %v2702_v15 = vpop.f32.mrb[5].mxu0 }
 0x5a2   : > { %v798_v18 = vpop.permute.xlu1 %797 }
 0x5a3   : > { %2709 = vmatpush3.xpose.msk.msra.mxu1 %vm286_vm0, %v798_v18 }
 0x5a4   : > { %2718 = vmatprep.subr.mxu1 %v3041_v13 }
 0x5a6   : > { %2711 = vmatmul.mubr.msk.f32.vlgmr.msra.gmra.mrb[6].mxu1 %vm286_vm0, %v795_v19 }
 0x5a7   : > { %2719 = vmatpush3.xpose.msk.msra.mxu1 %vm286_vm0, %v704_v14  ;;  %2720 = vmatprep.mubr.msk.f32.mxu1 %vm3040_vm1, %v3041_v13 }
 0x5a8   : > { %2728 = vmatprep.subr.mxu1 %v3041_v13 }
 0x5aa   : > { %2721 = vmatmul.mubr.msk.f32.vlgmr.msra.gmra.mrb[8].mxu1 %vm286_vm0, %v3214_v46 }
 0x5ab   : > { %2730 = vmatprep.mubr.msk.f32.mxu1 %vm3040_vm1, %v3041_v13 }
 0x679   : > { %v869_v24 = vpop.f32.mrb[6].mxu1 }
 0x67a   : > { %v870_v25 = vadd.f32 %v869_v24, %v3305_v23  ;;  %v2712_v26 = vpop.f32.mrb[7].mxu1 }
 0x67c   : > { %v874_v32 = vsel %vm873_vm8, %v870_v25, -inf }
 0x67d   : > { %875 = vmax.xlane.f32.xlu1 %v874_v32  ;;  %v1031_v33 = vpop.f32.mrb[8].mxu1 }
 0x67e   : > { %v1032_v34 = vadd.f32 %v3311_v27, %v1031_v33  ;;  %v2722_v35 = vpop.f32.mrb[9].mxu1 }
 0x680   : > { %v1035_v36 = vsel %vm484_vm2, %v1032_v34, -inf }
 0x681   : > { %1036 = vmax.xlane.f32.xlu0 %v1035_v36 }
 0x697   : > { %885 = vrot.lane.b32.xlu0 %v704_v14, %s3042_s14 }
 0x70a   : > { %v876_v37 = vpop.xlane.xlu1 %875 }
 0x70b   : > { %v877_v38 = vsub.f32 %v870_v25, %v876_v37 }
 0x70d   : > { %v878_v39 = vmul.f32 1.442695, %v877_v38 }
 0x70e   : > { %v1037_v40 = vpop.xlane.xlu0 %1036 }
 0x70f   : > { %2940 = vpow2.f32 %v878_v39  ;;  %v1038_v41 = vsub.f32 %v1032_v34, %v1037_v40  ;;  %v276_v34 = vld [vmem:[%s3619_s4 + $0x28] sm:$0xff] }
 0x711   : > { %v1039_v42 = vmul.f32 1.442695, %v1038_v41 }
 0x712   : > { %v886_v43 = vpop.permute.xlu0 %885 }
 0x713   : > { %2942 = vpow2.f32 %v1039_v42  ;;  %2714 = vmatpush3.msra.mxu0 %v886_v43  ;;  %v2566_v42 = vld [vmem:[%s3620_s5 + $0xe8] sm:$0xff]  ;;  %v2568_v43 = vld [vmem:[%s3620_s5 + $0xf8] sm:$0xff] }
 0x714   : > { %2723 = vmatprep.subr.mxu0 %v3041_v13 }
 0x719   : > { %v2941_v45 = vpop.eup %2940 }
 0x71a   : > { %v880_v46 = vsel %vm873_vm8, %v2941_v45, 0.0 }
 0x71b   : > { %881 = vadd.xlane.f32.xlu1 %v880_v46  ;;  %v2567_v46 = vld [vmem:[%s3620_s5 + $0xf0] sm:$0xff] }
 0x71d   : > { %v2943_v47 = vpop.eup %2942 }
 0x71e   : > { %v1041_v48 = vsel %vm484_vm2, %v2943_v47, 0.0 }
 0x71f   : > { %1042 = vadd.xlane.f32.xlu1 %v1041_v48  ;;  %v2570_v48 = vld [vmem:[%s3620_s5 + $0x108] sm:$0xff] }
 0x730   : > { %1050 = vrot.lane.b32.xlu1 %v704_v14, %s3044_s16 }
 0x7a8   : > { %v882_v49 = vpop.xlane.xlu1 %881 }
 0x7a9   : > { %2944 = vrcp.f32 %v882_v49  ;;  %v2572_v49 = vld [vmem:[%s3620_s5 + $0x118] sm:$0xff] }
 0x7ac   : > { %v1043_v53 = vpop.xlane.xlu1 %1042 }
 0x7ad   : > { %2946 = vrcp.f32 %v1043_v53  ;;  %v2569_v53 = vld [vmem:[%s3620_s5 + $0x100] sm:$0xff] }
 0x7b0   : > { %v1051_v56 = vpop.permute.xlu1 %1050 }
 0x7b3   : > { %v2945_v54 = vpop.eup %2944 }
 0x7b4   : > { %v884_v55 = vmul.f32 %v2945_v54, %v2941_v45  ;;  %v2859_v45 = vpack.c.bf16 %v2568_v43, %v2566_v42  ;;  %v2863_v54 = vpack.c.bf16 %v2572_v49, %v2570_v48 }
 0x7b6   : > { %2716 = vmatmul.mubr.msk.f32.vlgmr.msra.gmra.mrb[6].mxu0 %vm484_vm2, %v884_v55  ;;  %v2571_v55 = vld [vmem:[%s3620_s5 + $0x110] sm:$0xff] }
 0x7b7   : > { %v2947_v58 = vpop.eup %2946  ;;  %2724 = vmatpush3.msra.mxu0 %v1051_v56  ;;  %2725 = vmatprep.mubr.msk.f32.mxu0 %vm3040_vm1, %v3041_v13  ;;  %v2865_v56 = vpack.c.bf16 %v2571_v55, %v2569_v53 }
 0x7b8   : > { %v1045_v59 = vmul.f32 %v2947_v58, %v2943_v47  ;;  %2853 = vmatprep.subr.bf16.mxu0 %v3039_v10 }
 0x7ba   : > { %2726 = vmatmul.mubr.msk.f32.vlgmr.msra.gmra.mrb[8].mxu0 %vm484_vm2, %v1045_v59 }
 0x7bb   : > { %2741 = vmatprep.mubr.msk.f32.mxu0 %vm3040_vm1, %v3041_v13  ;;  %2855 = vmatpush3.bf16.msra.mxu0 %v2854_v63  ;;  %v1322_v63 = vsub.s32 4, %v3179_v28 }
 0x7bc   : > { %2856 = vmatprep.subr.bf16.mxu0 %v3039_v10 }
 0x7bf   : > { %2858 = vmatpush3.bf16.msra.mxu0 %v2857_v9 }
 0x7c0   : > { %2744 = vmatprep.subr.mxu0 %v3041_v13 }
 0x889   : > { %v957_v1 = vpop.f32.mrb[6].mxu0 }
 0x88a   : > { %v2717_v2 = vpop.f32.mrb[7].mxu0  ;;  %v958_v11 = vadd.f32 %v957_v1, %v405_v0  ;;  %v3406_v0 = vrot.slane %v3187_v30, %v1317_v62 }
 0x88c   : > { %v1200_v14 = vrot.slane %v958_v11, 7 }
 0x88d   : > { %v1122_v4 = vpop.f32.mrb[8].mxu0 }
 0x88e   : > { %v1123_v5 = vadd.f32 %v1122_v4, %v1049_v3  ;;  %v2727_v6 = vpop.f32.mrb[9].mxu0  ;;  %v3409_v3 = vrot.slane %v3187_v30, %v1322_v63  ;;  %v2573_v30 = vld [vmem:[%s3620_s5 + $0x120] sm:$0xff] }
 0x88f   : > { %v2868_v11 = vpack.c.bf16 %v2574_v7, %v2573_v30  ;;  %v2578_v30 = vld [vmem:[%s3620_s5 + $0x170] sm:$0xff] }
 0x890   : > { %2729 = vmatpush3.msra.mxu1 %v1123_v5 }
 0x891   : > { %2731 = vmatmul.mubr.msk.f32.vlgmr.msra.gmra.mrb[10].mxu1 %vm484_vm2, %v3263_v61  ;;  %2860 = vmatprep.subr.bf16.mxu1 %v2859_v45 }
 0x892   : > { %1411 = vmatprep.mubr.f32.mxu1 %v3041_v13 }
 0x964   : > { %v1192_v12 = vpop.f32.mrb[10].mxu1 }
 0x965   : > { %v1197_v15 = vrot.slane %v1192_v12, 1  ;;  %v1202_v16 = vrot.slane %v1192_v12, 6  ;;  %v2732_v17 = vpop.f32.mrb[11].mxu1 }
 0x967   : > { %v1205_v18 = vsel %vm1204_vm9, %v1197_v15, %v1200_v14 }
 0x968   : > { %v1207_v19 = vsel %vm1206_vm10, %v1205_v18, %v1202_v16  ;;  %v2581_v18 = vld [vmem:[%s3620_s5 + $0x1a0] sm:$0xff] }
 0x969   : > { %2742 = vmatmul.mubr.msk.f32.vlgmr.msra.gmra.mrb[10].mxu0 %vm286_vm0, %v1207_v19 }
 0x96a   : > { %2746 = vmatprep.mubr.msk.f32.mxu0 %vm3040_vm1, %v3041_v13 }
 0xa3c   : > { %v1277_v20 = vpop.f32.mrb[10].mxu0 }
 0xa3d   : > { %v1282_v21 = vrot.slane %v1277_v20, 1  ;;  %v2743_v22 = vpop.f32.mrb[11].mxu0 }
 0xa3f   : > { %1283 = vrot.lane.b32.xlu1 %v1282_v21, %s3044_s16 }
 0xab1   : > { %v1284_v24 = vpop.permute.xlu1 %1283 }
 0xab2   : > { %v1286_v25 = vadd.f32 %v1284_v24, %v1277_v20 }
 0xab4   : > { %v1292_v32 = vrot.slane %v1286_v25, %v3182_v29  ;;  %v1299_v33 = vrot.slane %v1286_v25, %v3190_v31 }
 0xab6   : > { %v1293_v35 = vsel %vm3358_vm11, %v1292_v32, %v1123_v5 }
 0xab7   : > { %v1300_v36 = vsel %vm3367_vm12, %v1299_v33, %v1293_v35 }
 0xab8   : > { %v1301_v52 = vadd.f32 %v1300_v36, %v3208_v44  ;;  %v2565_v44 = vld [vmem:[%s3620_s5 + $0xe0] sm:$0xff] }
 0xab9   : > { %v2861_v47 = vpack.c.bf16 %v2567_v46, %v2565_v44 }
 0xaba   : > { %v1302_v37 = vsel %vm286_vm0, %v1301_v52, 0.0 }
 0xabb   : > { %1303 = vadd.xlane.f32.xlu0 %v1302_v37  ;;  %2862 = vmatpush1.bf16.msra.mxu1 %v2861_v47 }
 0xabc   : > { %2864 = vmatprep.subr.bf16.mxu1 %v2863_v54 }
 0xabf   : > { %2866 = vmatpush1.bf16.msra.mxu1 %v2865_v56 }
 0xac0   : > { %2749 = vmatprep.subr.mxu1 %v3041_v13 }
 0xb48   : > { %v1304_v38 = vpop.xlane.xlu0 %1303 }
 0xb49   : > { %v1305_v39 = vmul.f32 0.03125, %v1304_v38 }
 0xb4b   : > { %v1306_v40 = vsub.f32 %v1301_v52, %v1305_v39 }
 0xb4d   : > { %v1307_v41 = vmul.f32 %v1306_v40, %v1306_v40 }
 0xb4f   : > { %v1308_v51 = vsel %vm286_vm0, %v1307_v41, 0.0 }
 0xb50   : > { %1309 = vadd.xlane.f32.xlu1 %v1308_v51 }
 0xbdd   : > { %v1310_v58 = vpop.xlane.xlu1 %1309 }
 0xbde   : > { %v1311_v59 = vmul.f32 0.03125, %v1310_v58 }
 0xbe0   : > { %v1312_v60 = vadd.f32 1e-12, %v1311_v59 }
 0xbe2   : > { %2948 = vrsqrt.f32 %v1312_v60 }
 0xbec   : > { %v2949_v1 = vpop.eup %2948 }
 0xbed   : > { %v1314_v2 = vmul.f32 %v2949_v1, %v1306_v40 }
 0xbef   : > { %v1319_v4 = vmul.f32 %v3406_v0, %v1314_v2 }
 0xbf1   : > { %v3413_v5 = vadd.f32 %v3409_v3, %v1319_v4 }
 0xbf3   : > { %2583 = vmatmul.mubr.msk.f32.vlgmr.msra.gmra.mrb[12].mxu1 %vm286_vm0, %v3413_v5 }
 0xbf4   : > { %2751 = vmatprep.mubr.msk.f32.mxu1 %vm3040_vm1, %v3041_v13 }
 0xcc6   : > { %v1413_v28 = vpop.f32.mrb[12].mxu1 }
 0xcc7   : > { %1492 = vrot.lane.b32.xlu1 %v1413_v28, %s3044_s16  ;;  %1419 = vrot.lane.b32.xlu0 %v1413_v28, %s3043_s15  ;;  %v1415_v6 = vpop.f32.mrb[13].mxu1 }
 0xccb   : > { %1640 = vrot.lane.b32.xlu0 %v1413_v28, %s3042_s14  ;;  %1642 = vrot.lane.b32.xlu1 %v1415_v6, %s3042_s14  ;;  %v2577_v6 = vld [vmem:[%s3620_s5 + $0x160] sm:$0xff] }
 0xccc   : > { %v2874_v7 = vpack.c.bf16 %v2578_v30, %v2577_v6 }
 0xd39   : > { %v1493_v8 = vpop.permute.xlu1 %1492  ;;  %v1420_v9 = vpop.permute.xlu0 %1419 }
 0xd3a   : > { %2745 = vmatpush3.msra.mxu0 %v1420_v9  ;;  %2750 = vmatpush3.msra.mxu1 %v1493_v8  ;;  %v2582_v8 = vld [vmem:[%s3620_s5 + $0x1b0] sm:$0xff] }
 0xd3b   : > { %2747 = vmatmul.mubr.msk.f32.vlgmr.msra.gmra.mrb[12].mxu0 %vm484_vm2, %v3237_v50  ;;  %2752 = vmatmul.mubr.msk.f32.vlgmr.msra.gmra.mrb[14].mxu1 %vm484_vm2, %v3252_v57  ;;  %v2575_v50 = vld [vmem:[%s3620_s5 + $0x140] sm:$0xff]  ;;  %v2576_v57 = vld [vmem:[%s3620_s5 + $0x150] sm:$0xff] }
 0xd3c   : > { %2765 = vmatprep.subr.mxu1 %v3041_v13  ;;  %2767 = vmatprep.mubr.msk.f32.mxu1 %vm3040_vm1, %v3041_v13  ;;  %v2871_v16 = vpack.c.bf16 %v2576_v57, %v2575_v50  ;;  %v2579_v57 = vld [vmem:[%s3620_s5 + $0x180] sm:$0xff] }
 0xd3d   : > { %v1641_v12 = vpop.permute.xlu0 %1640  ;;  %v1643_v14 = vpop.permute.xlu1 %1642  ;;  %2867 = vmatprep.subr.bf16.mxu0 %v3039_v10  ;;  %2762 = vmatprep.mubr.msk.f32.mxu0 %vm3040_vm1, %v3041_v13 }
 0xd3e   : > { %v1644_v15 = vsel %vm286_vm0, %v1641_v12, %v1643_v14  ;;  %2869 = vmatpush3.bf16.msra.mxu0 %v2868_v11  ;;  %v1976_v12 = vrot.slane %v2582_v8, %v3182_v29 }
 0xd3f   : > { %2766 = vmatpush3.msra.mxu1 %v1644_v15  ;;  %2870 = vmatprep.subr.bf16.mxu0 %v3039_v10 }
 0xd40   : > { %2768 = vmatmul.mubr.msk.f32.vlgmr.msra.gmra.mrb[16].mxu1 %vm484_vm2, %v3263_v61  ;;  %2770 = vmatprep.subr.mxu1 %v3041_v13 }
 0xd41   : > { %2772 = vmatprep.mubr.msk.f32.mxu1 %vm3040_vm1, %v3041_v13 }
 0xd42   : > { %2872 = vmatpush3.bf16.msra.mxu0 %v2871_v16  ;;  %v2580_v16 = vld [vmem:[%s3620_s5 + $0x190] sm:$0xff] }
 0xd43   : > { %2775 = vmatprep.subr.mxu0 %v3041_v13 }
 0xe0e   : > { %v1488_v17 = vpop.f32.mrb[12].mxu0  ;;  %v1561_v19 = vpop.f32.mrb[14].mxu1 }
 0xe0f   : > { %v1562_v20 = vadd.f32 %v1561_v19, %v1488_v17  ;;  %v2748_v21 = vpop.f32.mrb[13].mxu0  ;;  %v2753_v22 = vpop.f32.mrb[15].mxu1  ;;  %v2877_v17 = vpack.c.bf16 %v2580_v16, %v2579_v57 }
 0xe11   : > { %v1565_v24 = vadd.f32 %v2581_v18, %v1562_v20 }
 0xe13   : > { %2763 = vmatmul.mubr.msk.f32.vlgmr.msra.gmra.mrb[14].mxu0 %vm286_vm0, %v1565_v24  ;;  %v1712_v25 = vpop.f32.mrb[16].mxu1 }
 0xe14   : > { %v1717_v32 = vrot.slane %v1712_v25, 7  ;;  %v2769_v33 = vpop.f32.mrb[17].mxu1  ;;  %2777 = vmatprep.mubr.msk.f32.mxu0 %vm3040_vm1, %v3041_v13 }
 0xe16   : > { %1718 = vrot.lane.b32.xlu0 %v1717_v32, %s3044_s16 }
 0xe88   : > { %v1719_v52 = vpop.permute.xlu0 %1718 }
 0xe89   : > { %v1721_v37 = vadd.f32 %v1719_v52, %v1712_v25 }
 0xe8b   : > { %v1723_v39 = vrot.slane %v1721_v37, 1 }
 0xee6   : > { %v1635_v35 = vpop.f32.mrb[14].mxu0 }
 0xee7   : > { %1725 = vrot.lane.b32.xlu1 %v1635_v35, %s3043_s15  ;;  %v2764_v36 = vpop.f32.mrb[15].mxu0  ;;  %s231_s15 = sand.u32 1, %s3028_s27  }
 0xee8   : > { %s232_s21 = scalar_lea.vmem [#allocation4], %s231_s15  ;;  %s2467_s25 = scalar_lea.sflag [#allocation5], %s231_s15 }
 0xee9   : > { %s2479_s22 = sshll.u32 %s232_s21, 4  ;;  %s3575_s22 = int_to_ptr.vmem [resolvable:$true] %s2479_s22 }
 0xeea   : > { %s2972_s30 = scalar_lea.vmem %s3575_s22, 16 }
 0xeeb   : > { %p2973_p4 = scmp.ne.s32.totalorder %s3575_s22, %s2972_s30 }
 0xeed   : > { %p2974_p5 = pnand %p2973_p4, %p3123_p10 }
 0xeef   : > { %p2975_p6 = pneg %p2974_p5 }
 0xf59   : > { %v1726_v38 = vpop.permute.xlu1 %1725 }
 0xf5a   : > { %2771 = vmatpush3.xpose.msk.msra.mxu1 %vm286_vm0, %v1726_v38 }
 0xf5b   : > { %2780 = vmatprep.subr.mxu1 %v3041_v13 }
 0xf5d   : > { %2773 = vmatmul.mubr.msk.f32.vlgmr.msra.gmra.mrb[18].mxu1 %vm286_vm0, %v1723_v39 }
 0xf5e   : > { %2781 = vmatpush3.xpose.msk.msra.mxu1 %vm286_vm0, %v1635_v35  ;;  %2782 = vmatprep.mubr.msk.f32.mxu1 %vm3040_vm1, %v3041_v13 }
 0xf5f   : > { %2790 = vmatprep.subr.mxu1 %v3041_v13 }
 0xf61   : > { %2783 = vmatmul.mubr.msk.f32.vlgmr.msra.gmra.mrb[20].mxu1 %vm286_vm0, %v1413_v28 }
 0xf62   : > { %2792 = vmatprep.mubr.msk.f32.mxu1 %vm3040_vm1, %v3041_v13 }
0x1030   : > { %v1797_v40 = vpop.f32.mrb[18].mxu1 }
0x1031   : > { %v1798_v41 = vadd.f32 %v1797_v40, %v3305_v23  ;;  %v2774_v51 = vpop.f32.mrb[19].mxu1 }
0x1033   : > { %v1801_v42 = vsel %vm873_vm8, %v1798_v41, -inf }
0x1034   : > { %1802 = vmax.xlane.f32.xlu0 %v1801_v42  ;;  %v1958_v43 = vpop.f32.mrb[20].mxu1 }
0x1035   : > { %v1959_v45 = vadd.f32 %v3311_v27, %v1958_v43  ;;  %v2784_v44 = vpop.f32.mrb[21].mxu1 }
0x1037   : > { %v1962_v46 = vsel %vm484_vm2, %v1959_v45, -inf }
0x1038   : > { %1963 = vmax.xlane.f32.xlu1 %v1962_v46 }
0x1049   : > { %1812 = vrot.lane.b32.xlu1 %v1635_v35, %s3042_s14  ;;  %s239_s14 = scalar_lea.vmem %s3617_s2, %s3135_s13 }
0x10c1   : > { %v1803_v47 = vpop.xlane.xlu0 %1802 }
0x10c2   : > { %v1804_v48 = vsub.f32 %v1798_v41, %v1803_v47 }
0x10c4   : > { %v1805_v49 = vmul.f32 1.442695, %v1804_v48 }
0x10c5   : > { %v1964_v53 = vpop.xlane.xlu1 %1963 }
0x10c6   : > { %2950 = vpow2.f32 %v1805_v49  ;;  %v1965_v54 = vsub.f32 %v1959_v45, %v1964_v53 }
0x10c8   : > { %v1966_v23 = vmul.f32 1.442695, %v1965_v54 }
0x10c9   : > { %v1813_v55 = vpop.permute.xlu1 %1812 }
0x10ca   : > { %2952 = vpow2.f32 %v1966_v23  ;;  %2776 = vmatpush3.msra.mxu0 %v1813_v55  ;;  %v278_v55 = vld [vmem:[%s3619_s4 + $0x38] sm:$0xff] }
0x10cb   : > { %2785 = vmatprep.subr.mxu0 %v3041_v13 }
0x10d0   : > { %v2951_v56 = vpop.eup %2950 }
0x10d1   : > { %v1807_v27 = vsel %vm873_vm8, %v2951_v56, 0.0 }
0x10d2   : > { %1808 = vadd.xlane.f32.xlu0 %v1807_v27 }
0x10d4   : > { %v2953_v58 = vpop.eup %2952 }
0x10d5   : > { %v1968_v59 = vsel %vm484_vm2, %v2953_v58, 0.0 }
0x10d6   : > { %1969 = vadd.xlane.f32.xlu0 %v1968_v59 }
0x10ec   : > { %1977 = vrot.lane.b32.xlu0 %v1635_v35, %s3044_s16 }
0x115f   : > { %v1809_v60 = vpop.xlane.xlu0 %1808 }
0x1160   : > { %2954 = vrcp.f32 %v1809_v60  ;;  %v283_v60 = vld [vmem:[%s3619_s4 + $0x60] sm:$0xff] }
0x1163   : > { %v1970_v62 = vpop.xlane.xlu0 %1969 }
0x1164   : > { %2956 = vrcp.f32 %v1970_v62 }
0x1167   : > { %v1978_v2 = vpop.permute.xlu0 %1977 }
0x116a   : > { %v2955_v63 = vpop.eup %2954 }
0x116b   : > { %v1811_v1 = vmul.f32 %v2955_v63, %v2951_v56  ;;  %v279_v56 = vld [vmem:[%s3619_s4 + $0x40] sm:$0xff] }
0x116c   : > { %v2883_v27 = vpack.c.bf16 %v279_v56, %v278_v55 }
0x116d   : > { %2778 = vmatmul.mubr.msk.f32.vlgmr.msra.gmra.mrb[16].mxu0 %vm484_vm2, %v1811_v1 }
0x116e   : > { %v2957_v4 = vpop.eup %2956  ;;  %2786 = vmatpush3.msra.mxu0 %v1978_v2  ;;  %2787 = vmatprep.mubr.msk.f32.mxu0 %vm3040_vm1, %v3041_v13 }
0x116f   : > { %v1972_v28 = vmul.f32 %v2957_v4, %v2953_v58  ;;  %2873 = vmatprep.subr.bf16.mxu0 %v3039_v10  ;;  %v280_v58 = vld [vmem:[%s3619_s4 + $0x48] sm:$0xff] }
0x1171   : > { %2788 = vmatmul.mubr.msk.f32.vlgmr.msra.gmra.mrb[18].mxu0 %vm484_vm2, %v1972_v28 }
0x1172   : > { %2803 = vmatprep.mubr.msk.f32.mxu0 %vm3040_vm1, %v3041_v13  ;;  %2875 = vmatpush3.bf16.msra.mxu0 %v2874_v7 }
0x1173   : > { %2876 = vmatprep.subr.bf16.mxu0 %v3039_v10 }
0x1176   : > { %2878 = vmatpush3.bf16.msra.mxu0 %v2877_v17 }
0x1177   : > { %2885 = vmatprep.subr.bf16.mxu0 %v3039_v10 }
0x1240   : > { %v1884_v9 = vpop.f32.mrb[16].mxu0 }
0x1241   : > { %v2779_v11 = vpop.f32.mrb[17].mxu0  ;;  %v1885_v18 = vadd.f32 %v2582_v8, %v1884_v9  ;;  %v284_v8 = vld [vmem:[%s3619_s4 + $0x68] sm:$0xff] }
0x1243   : > { %v2127_v20 = vrot.slane %v1885_v18, 7 }
0x1244   : > { %v2049_v14 = vpop.f32.mrb[18].mxu0 }
0x1245   : > { %v2050_v15 = vadd.f32 %v2049_v14, %v1976_v12  ;;  %v2789_v50 = vpop.f32.mrb[19].mxu0 }
0x1247   : > { %2791 = vmatpush3.msra.mxu1 %v2050_v15 }
0x1248   : > { %2793 = vmatmul.mubr.msk.f32.vlgmr.msra.gmra.mrb[22].mxu1 %vm484_vm2, %v3263_v61  ;;  %2806 = vmatprep.subr.mxu1 %v3041_v13 }
0x1249   : > { %2808 = vmatprep.mubr.msk.f32.mxu1 %vm3040_vm1, %v3041_v13 }
0x131b   : > { %v2119_v19 = vpop.f32.mrb[22].mxu1 }
0x131c   : > { %v2124_v21 = vrot.slane %v2119_v19, 1  ;;  %v2129_v22 = vrot.slane %v2119_v19, 6  ;;  %v2794_v24 = vpop.f32.mrb[23].mxu1 }
0x131e   : > { %v2131_v25 = vsel %vm1204_vm9, %v2124_v21, %v2127_v20 }
0x131f   : > { %v2132_v32 = vsel %vm1206_vm10, %v2131_v25, %v2129_v22 }
0x1320   : > { %2804 = vmatmul.mubr.msk.f32.vlgmr.msra.gmra.mrb[20].mxu0 %vm286_vm0, %v2132_v32 }
0x1321   : > { %2830 = vmatprep.mubr.msk.f32.mxu0 %vm3040_vm1, %v3041_v13 }
0x13f3   : > { %v2202_v33 = vpop.f32.mrb[20].mxu0 }
0x13f4   : > { %v2207_v35 = vrot.slane %v2202_v33, 1  ;;  %v2805_v36 = vpop.f32.mrb[21].mxu0 }
0x13f6   : > { %2208 = vrot.lane.b32.xlu1 %v2207_v35, %s3044_s16 }
0x1468   : > { %v2209_v52 = vpop.permute.xlu1 %2208 }
0x1469   : > { %v2211_v37 = vadd.f32 %v2209_v52, %v2202_v33 }
0x146b   : > { %v2215_v38 = vrot.slane %v2211_v37, %v3182_v29  ;;  %v2220_v39 = vrot.slane %v2211_v37, %v3190_v31 }
0x146d   : > { %v2216_v40 = vsel %vm3358_vm11, %v2215_v38, %v2050_v15 }
0x146e   : > { %v2221_v41 = vsel %vm3367_vm12, %v2220_v39, %v2216_v40 }
0x146f   : > { %v2222_v51 = vadd.f32 %v2221_v41, %v3413_v5  ;;  %v277_v5 = vld [vmem:[%s3619_s4 + $0x30] sm:$0xff] }
0x1470   : > { %v2880_v23 = vpack.c.bf16 %v277_v5, %v276_v34 }
0x1471   : > { %v2223_v42 = vsel %vm286_vm0, %v2222_v51, 0.0 }
0x1472   : > { %2224 = vadd.xlane.f32.xlu1 %v2223_v42 }
0x14ff   : > { %v2225_v43 = vpop.xlane.xlu1 %2224 }
0x1500   : > { %v2226_v45 = vmul.f32 0.03125, %v2225_v43 }
0x1502   : > { %v2227_v44 = vsub.f32 %v2222_v51, %v2226_v45 }
0x1504   : > { %v2228_v46 = vmul.f32 %v2227_v44, %v2227_v44 }
0x1506   : > { %v2229_v47 = vsel %vm286_vm0, %v2228_v46, 0.0 }
0x1507   : > { %2230 = vadd.xlane.f32.xlu0 %v2229_v47 }
0x1594   : > { %v2231_v29 = vpop.xlane.xlu0 %2230 }
0x1595   : > { %v2232_v31 = vmul.f32 0.03125, %v2231_v29 }
0x1597   : > { %v2233_v48 = vadd.f32 1e-12, %v2232_v31 }
0x1599   : > { %2958 = vrsqrt.f32 %v2233_v48 }
0x15a3   : > { %v2959_v26 = vpop.eup %2958 }
0x15a4   : > { %v2235_v49 = vmul.f32 %v2959_v26, %v2227_v44 }
0x15a6   : > { %v2236_v53 = vmul.f32 %v2235_v49, %v3406_v0 }
0x15a8   : > { %v2237_v54 = vadd.f32 %v2236_v53, %v3409_v3 }
0x15aa   : > { %2807 = vmatpush3.msra.mxu1 %v2237_v54 }
0x15ab   : > { %2809 = vmatmul.mubr.msk.f32.vlgmr.msra.gmra.mrb[24].mxu1 %vm484_vm2, %v3263_v61  ;;  %2879 = vmatprep.subr.bf16.mxu1 %v3039_v10  ;;  %v281_v61 = vld [vmem:[%s3619_s4 + $0x50] sm:$0xff] }
0x15ac   : > { %2881 = vmatpush3.bf16.msra.mxu1 %v2880_v23  ;;  %2819 = vmatprep.mubr.msk.f32.mxu1 %vm3040_vm1, %v3041_v13  ;;  %v2886_v59 = vpack.c.bf16 %v281_v61, %v280_v58  ;;  %v282_v13 = vld [vmem:[%s3619_s4 + $0x58] sm:$0xff] }
0x15ad   : > { %2882 = vmatprep.subr.bf16.mxu1 %v3039_v10  ;;  %v2889_v62 = vpack.c.bf16 %v283_v60, %v282_v13 }
0x15ae   : > { %2887 = vmatpush3.bf16.msra.mxu0 %v2886_v59 }
0x15af   : > { %2888 = vmatprep.subr.bf16.mxu0 %v3039_v10  ;;  %v2387_v10 = vld [vmem:[%s239_s14] sm:$0x1] }
0x15b0   : > { %2884 = vmatpush3.bf16.msra.mxu1 %v2883_v27 }
0x15b2   : > { %2890 = vmatpush3.bf16.msra.mxu0 %v2889_v62 }
0x167e   : > { %v2304_v0 = vpop.f32.mrb[24].mxu1 }
0x167f   : > { %2820 = vmatmul.mubr.msk.f32.vlgmr.msra.gmra.mrb[26].mxu1 %vm286_vm0, %v2304_v0  ;;  %v2810_v3 = vpop.f32.mrb[25].mxu1 }
0x1752   : > { %v2377_v63 = vpop.f32.mrb[26].mxu1 }
0x1753   : > { %v2382_v1 = vrot.slane %v2377_v63, 1  ;;  %v2821_v2 = vpop.f32.mrb[27].mxu1 }
0x1755   : > { %2383 = vrot.lane.b32.xlu0 %v2382_v1, %s3044_s16  ;;  %s2599_s16 = sshll.u32 %s3106_s29, 4  ;;  %s3046_s29 = smov [#allocation4]  }
0x1756   : > { %s3573_s24 = scalar_lea.hbm %s3621_s6, %s2599_s16  ;;  %s2976_s8 = sshll.u32 %s3046_s29, 4  ;;  %s2977_s8 = int_to_ptr.vmem [resolvable:$false] %s2976_s8 }
0x1757   : > { %s2978_s9 = scalar_lea.vmem %s2977_s8, 32  ;;  %p2979_p7 = scmp.lt.s32.totalorder %s3575_s22, %s2977_s8 }
0x1758   : > { %p2980_p8 = scmp.lt.s32.totalorder %s2978_s9, %s2972_s30 }
0x175a   : > { %p2981_p9 = por %p2980_p8, %p2979_p7 }
0x175c   : > { %p2982_p12 = pnand %p2981_p9, %p2975_p6 }
0x17c7   : > { %v2384_v4 = vpop.permute.xlu0 %2383 }
0x17c8   : > { %v2386_v28 = vadd.f32 %v2384_v4, %v2377_v63 }
0x17ca   : > { %v2388_v6 = vadd.f32 %v2387_v10, %v2386_v28 }
0x17cc   : > { %vm2389_vm13 = vcmp.ge.f32.partialorder %v2388_v6, 0.0  ;;  %v2390_v30 = vmul.f32 0.1, %v2388_v6 }
0x17ce   : > { %v2391_v7 = vsel %vm2389_vm13, %v2388_v6, %v2390_v30 }
0x17cf   : > { %2831 = vmatmul.mubr.msk.f32.vlgmr.msra.gmra.mrb[22].mxu0 %vm286_vm0, %v2391_v7 }
0x18a2   : > { %v2461_v9 = vpop.f32.mrb[22].mxu0 }
0x18a3   : > { %v2462_v11 = vadd.f32 %v2461_v9, %v284_v8  ;;  %v2832_v12 = vpop.f32.mrb[23].mxu0 }
0x18a5   : > { %2465 = vst [vmem:[%s232_s21] sm:$0x1] %v2462_v11 }
0x18a6   : > { %2985 = shalt.err (!%p2982_p12)
}
0x18a7   : > { %s2986_s19 = scalar_lea.hbm %s3573_s24, 16  ;;  %s2990_s15 = scalar_lea.hbm %s3621_s6, 32 }
0x18a8   : > { %p2987_p13 = scmp.ne.s32.totalorder %s3573_s24, %s2986_s19  ;;  %p2991_p2 = scmp.lt.u32.totalorder %s3573_s24, %s3621_s6 }
0x18a9   : > { %p2992_p3 = scmp.lt.u32.totalorder %s2990_s15, %s2986_s19  ;;  %p2994_p5 = scmp.lt.u32.totalorder %s2986_s19, %s3573_s24 }
0x18aa   : > { %p2988_p0 = pnand %p2987_p13, %p3123_p10 }
0x18ab   : > { %p2993_p4 = por %p2992_p3, %p2991_p2 }
0x18ac   : > { %p2989_p1 = pneg %p2988_p0 }
0x18ad   : > { %p2995_p6 = por %p2994_p5, %p2993_p4 }
0x18af   : > { %p2996_p7 = pnand %p2995_p6, %p2989_p1 }
0x18b1   : > { %2999 = shalt.err (!%p2996_p7)
}
0x18b2   : > { %2891 = dma.vmem_to_hbm [thread:$0]  (%p3123_p10), %s3575_s22, 16, %s3573_s24, %s2467_s25  }
0x18b3 PF: > { %p2897_p8 = scmp.ge.s32.totalorder %s3036_s28, 2  ;;  %s2491_s16 = sand.u32 1, %s3024_s26  }
0x18b4   : > { %s2492_s21 = scalar_lea.sflag [#allocation5], %s2491_s16 }
0x18b5   : > { %p2894_p9 = pnand %p2897_p8, %p3127_p11 }
0x18b7   : > { %3019 = dma.done.wait (!%p2894_p9), %s2492_s21, 16  }
0x18b8   : > { %3021 = vsyncadd (!%p2894_p9), %s2492_s21, 4294967280  ;;  %p22_p12 = scmp.ge.s32.totalorder %s3110_s7, 4   ;;  %s3628_s26 = smov %s3028_s27 }
0x18b9   : > { %s3629_s27 = smov %s3032_s0  ;;  %s3630_s0 = smov %s3121_s10 }
0x18ba   : > { %s3631_s28 = smov %s3110_s7  ;;  %24 = sbr.rel (!%p22_p12) target bundleno = 18 (0x12), region = 81 }
0x18c1   :  { %2496 = vsyncpa [#allocation5], 1 }
0x18c2   :  { %2498 = vsyncpa [#allocation5 + $0x1], 1 }

</bundles_post_ra>
